<compile_context>
chip_gen: v7x
topology: tpu7x:2x2x1
jax: 0.10.0
libtpu: 0.0.40
codegen_flags: <defaults>
</compile_context>

<pallas_src>
import jax
import jax.numpy as jnp
from jax.experimental import pallas as pl
from jax.experimental.pallas import tpu as pltpu

K = 4        # every ConvTranspose2d in the module uses a 4x4 kernel
BN_EPS = 1e-5


# ---------------------------------------------------------------------------
# Pallas kernels: GEMM with fused epilogues
# ---------------------------------------------------------------------------
def _convt_bn_relu_kernel(w_ref, a_ref, bias_ref, gamma_ref, beta_ref, o_ref):
    # out^T = W_mat @ patches^T : (Cout, Cin*K*K) @ (Cin*K*K, M), M = N*OH*OW
    # on the lane axis / MXU free dimension.  Fused epilogue: conv bias,
    # BatchNorm2d with batch statistics (training mode, biased var), ReLU.
    z = jnp.dot(w_ref[...], a_ref[...], preferred_element_type=jnp.float32)
    z = z + bias_ref[...]
    mean = jnp.mean(z, axis=1, keepdims=True)
    var = jnp.mean((z - mean) ** 2, axis=1, keepdims=True)
    zn = (z - mean) * jax.lax.rsqrt(var + BN_EPS)
    o_ref[...] = jnp.maximum(zn * gamma_ref[...] + beta_ref[...], 0.0)


def _convt_tanh_kernel(w_ref, a_ref, bias_ref, o_ref):
    z = jnp.dot(w_ref[...], a_ref[...], preferred_element_type=jnp.float32)
    o_ref[...] = jnp.tanh(z + bias_ref[...])


# ---------------------------------------------------------------------------
# Pallas wrappers (small problem: one full-array block per call)
# ---------------------------------------------------------------------------
def _full_spec(shape):
    return pl.BlockSpec(shape, lambda i: (0,) * len(shape))


def convt_bn_relu(w_mat, a_t, bias, gamma, beta):
    cout, kdim = w_mat.shape
    m = a_t.shape[1]
    return pl.pallas_call(
        _convt_bn_relu_kernel,
        out_shape=jax.ShapeDtypeStruct((cout, m), jnp.float32),
        grid=(1,),
        in_specs=[
            _full_spec((cout, kdim)),
            _full_spec((kdim, m)),
            _full_spec((cout, 1)),
            _full_spec((cout, 1)),
            _full_spec((cout, 1)),
        ],
        out_specs=_full_spec((cout, m)),
        compiler_params=pltpu.CompilerParams(dimension_semantics=("arbitrary",)),
    )(w_mat, a_t, bias.reshape(cout, 1), gamma.reshape(cout, 1),
      beta.reshape(cout, 1))


def convt_tanh(w_mat, a_t, bias):
    cout, kdim = w_mat.shape
    m = a_t.shape[1]
    return pl.pallas_call(
        _convt_tanh_kernel,
        out_shape=jax.ShapeDtypeStruct((cout, m), jnp.float32),
        grid=(1,),
        in_specs=[
            _full_spec((cout, kdim)),
            _full_spec((kdim, m)),
            _full_spec((cout, 1)),
        ],
        out_specs=_full_spec((cout, m)),
        compiler_params=pltpu.CompilerParams(dimension_semantics=("arbitrary",)),
    )(w_mat, a_t, bias.reshape(cout, 1))


# ---------------------------------------------------------------------------
# ConvTranspose2d lowering glue (channel-major layout, no big transposes)
# ---------------------------------------------------------------------------
def _conv_transpose_patches_t(x_cm, spatial, stride, padding):
    """Build patches^T of shape (Cin*K*K, N*OH*OW) for ConvTranspose2d(k=4).

    x_cm is the channel-major flat activation (Cin, N*H*W).
    """
    cin = x_cm.shape[0]
    n, h, w = spatial
    x = x_cm.reshape(cin, n, h, w)

    # zero-insertion (stride dilation) + (K-1-padding) zero padding
    hd, wd = (h - 1) * stride + 1, (w - 1) * stride + 1
    xd = jnp.zeros((cin, n, hd, wd), x.dtype).at[:, :, ::stride, ::stride].set(x)
    p = K - 1 - padding
    xp = jnp.pad(xd, ((0, 0), (0, 0), (p, p), (p, p)))

    oh = (h - 1) * stride - 2 * padding + K
    ow = (w - 1) * stride - 2 * padding + K

    # 16 static tap slices, stacked next to the channel axis so rows come out
    # in (ci, ki, kj) order -- no transposes needed.
    taps = [xp[:, :, i:i + oh, j:j + ow] for i in range(K) for j in range(K)]
    a_t = jnp.stack(taps, axis=1)                      # (Cin, K*K, N, OH, OW)
    return a_t.reshape(cin * K * K, n * oh * ow), (n, oh, ow)


def _weight_matrix(w_t):
    # PyTorch ConvTranspose weight (Cin, Cout, K, K) -> equivalent direct-conv
    # matrix (Cout, Cin*K*K): spatial flip + in/out channel swap.
    cout = w_t.shape[1]
    w_conv = jnp.flip(w_t, axis=(2, 3)).transpose(1, 0, 2, 3)  # (Cout, Cin, K, K)
    return w_conv.reshape(cout, -1)


# ---------------------------------------------------------------------------
# Generator forward (matches the nn.Sequential in the PyTorch module)
# ---------------------------------------------------------------------------
def generator_forward(params, x):
    n, nz = x.shape[0], x.shape[1]
    # latent (N, nz, 1, 1) -> channel-major flat (nz, N*1*1)
    xc = jnp.transpose(x, (1, 0, 2, 3)).reshape(nz, n)
    spatial = (n, 1, 1)

    # blocks 1-3: ConvT + BN + ReLU   (1x1 -> 4x4 -> 8x8 -> 16x16)
    for wk, bk, gk, bek, stride, padding in (
        ("w1", "b1", "g1", "be1", 1, 0),
        ("w2", "b2", "g2", "be2", 2, 1),
        ("w3", "b3", "g3", "be3", 2, 1),
    ):
        a_t, spatial = _conv_transpose_patches_t(xc, spatial, stride, padding)
        xc = convt_bn_relu(_weight_matrix(params[wk]), a_t,
                           params[bk], params[gk], params[bek])

    # block 4: ConvT(nf -> nc, k4, s2, p3) + tanh   (16x16 -> 28x28)
    a_t, (n_, oh, ow) = _conv_transpose_patches_t(xc, spatial, 2, 3)
    out = convt_tanh(_weight_matrix(params["w4"]), a_t, params["b4"])  # (nc, N*OH*OW)
    nc_ = out.shape[0]
    return out.reshape(nc_, n_, oh, ow).transpose(1, 0, 2, 3)          # (N, nc, OH, OW)


# ---------------------------------------------------------------------------
# Pure-JAX reference (XLA dilated conv) for a numerical self-check
# ---------------------------------------------------------------------------
def _reference_forward(params, x):
    def convt(x, w_t, b, stride, padding):
        w_conv = jnp.flip(w_t, axis=(2, 3)).transpose(1, 0, 2, 3)
        p = K - 1 - padding
        y = jax.lax.conv_general_dilated(
            x, w_conv, window_strides=(1, 1), padding=((p, p), (p, p)),
            lhs_dilation=(stride, stride),
            dimension_numbers=("NCHW", "OIHW", "NCHW"))
        return y + b.reshape(1, -1, 1, 1)

    def bn_relu(x, g, be):
        mean = jnp.mean(x, axis=(0, 2, 3), keepdims=True)
        var = jnp.mean((x - mean) ** 2, axis=(0, 2, 3), keepdims=True)
        xn = (x - mean) * jax.lax.rsqrt(var + BN_EPS)
        return jnp.maximum(xn * g.reshape(1, -1, 1, 1) + be.reshape(1, -1, 1, 1), 0.0)

    x = bn_relu(convt(x, params["w1"], params["b1"], 1, 0), params["g1"], params["be1"])
    x = bn_relu(convt(x, params["w2"], params["b2"], 2, 1), params["g2"], params["be2"])
    x = bn_relu(convt(x, params["w3"], params["b3"], 2, 1), params["g3"], params["be3"])
    return jnp.tanh(convt(x, params["w4"], params["b4"], 2, 3))


def init_params(key, n_feature_maps, n_latents, n_channels):
    nf = n_feature_maps
    ks = jax.random.split(key, 8)
    w_init = lambda k, shape: 0.02 * jax.random.normal(k, shape, jnp.float32)
    params = {
        "w1": w_init(ks[0], (n_latents, nf * 4, K, K)),
        "b1": jnp.zeros((nf * 4,), jnp.float32),
        "g1": 1.0 + 0.02 * jax.random.normal(ks[1], (nf * 4,), jnp.float32),
        "be1": jnp.zeros((nf * 4,), jnp.float32),
        "w2": w_init(ks[2], (nf * 4, nf * 2, K, K)),
        "b2": jnp.zeros((nf * 2,), jnp.float32),
        "g2": 1.0 + 0.02 * jax.random.normal(ks[3], (nf * 2,), jnp.float32),
        "be2": jnp.zeros((nf * 2,), jnp.float32),
        "w3": w_init(ks[4], (nf * 2, nf, K, K)),
        "b3": jnp.zeros((nf,), jnp.float32),
        "g3": 1.0 + 0.02 * jax.random.normal(ks[5], (nf,), jnp.float32),
        "be3": jnp.zeros((nf,), jnp.float32),
        "w4": w_init(ks[6], (nf, n_channels, K, K)),
        "b4": jnp.zeros((n_channels,), jnp.float32),
    }
    return params, ks[7]


if __name__ == "__main__":
    n_feature_maps, n_latents, n_channels, batch = 8, 8, 1, 2

    key = jax.random.PRNGKey(0)
    params, key_x = init_params(key, n_feature_maps, n_latents, n_channels)
    x = jax.random.normal(key_x, (batch, n_latents, 1, 1), jnp.float32)

    fwd = jax.jit(generator_forward)
    y = fwd(params, x)
    jax.block_until_ready(y)

    assert y.shape == (batch, n_channels, 28, 28), y.shape
    assert bool(jnp.all(jnp.isfinite(y)))
    assert bool(jnp.all(jnp.abs(y) <= 1.0))  # tanh output range

    # numerical self-check against XLA's dilated conv implementation
    y_ref = jax.jit(_reference_forward)(params, x)
    jax.block_until_ready(y_ref)
    assert bool(jnp.allclose(y, y_ref, rtol=1e-3, atol=1e-3)), float(
        jnp.max(jnp.abs(y - y_ref)))

    print("KERNEL_OK")
</pallas_src>

<mosaic_0001>
module attributes {stable_mosaic.version = 11 : i64} {
  func.func @_convt_bn_relu_kernel(%arg0: i32, %arg1: memref<32x128xf32, #tpu.memory_space<vmem>>, %arg2: memref<128x32xf32, #tpu.memory_space<vmem>>, %arg3: memref<32x1xf32, #tpu.memory_space<vmem>>, %arg4: memref<32x1xf32, #tpu.memory_space<vmem>>, %arg5: memref<32x1xf32, #tpu.memory_space<vmem>>, %arg6: memref<32x32xf32, #tpu.memory_space<vmem>>) attributes {dimension_semantics = [#tpu.dimension_semantics<arbitrary>], iteration_bounds = array<i64: 1>, scalar_prefetch = 0 : i64, scratch_operands = 0 : i64, tpu.core_type = #tpu.core_type<tc>, window_params = [{pipeline_mode = #tpu.pipeline_mode<synchronous>, transform_indices = @transform_0, window_bounds = array<i64: 32, 128>}, {pipeline_mode = #tpu.pipeline_mode<synchronous>, transform_indices = @transform_1, window_bounds = array<i64: 128, 32>}, {pipeline_mode = #tpu.pipeline_mode<synchronous>, transform_indices = @transform_2, window_bounds = array<i64: 32, 1>}, {pipeline_mode = #tpu.pipeline_mode<synchronous>, transform_indices = @transform_3, window_bounds = array<i64: 32, 1>}, {pipeline_mode = #tpu.pipeline_mode<synchronous>, transform_indices = @transform_4, window_bounds = array<i64: 32, 1>}, {pipeline_mode = #tpu.pipeline_mode<synchronous>, transform_indices = @transform_5, window_bounds = array<i64: 32, 32>}]} {
    %c0 = arith.constant 0 : index
    %c0_0 = arith.constant 0 : index
    %0 = vector.load %arg1[%c0, %c0_0] : memref<32x128xf32, #tpu.memory_space<vmem>>, vector<32x128xf32>
    %c0_1 = arith.constant 0 : index
    %c0_2 = arith.constant 0 : index
    %1 = vector.load %arg2[%c0_1, %c0_2] : memref<128x32xf32, #tpu.memory_space<vmem>>, vector<128x32xf32>
    %cst = arith.constant dense<0.000000e+00> : vector<32x32xf32>
    %2 = tpu.matmul %0, %1, %cst {dimension_numbers = #tpu.dot_dimension_numbers<[1], [0], [0], [1], [0, 0, 1, 1], [], []>} : vector<32x128xf32>, vector<128x32xf32>, vector<32x32xf32> -> vector<32x32xf32>
    %c0_3 = arith.constant 0 : index
    %c0_4 = arith.constant 0 : index
    %3 = vector.load %arg3[%c0_3, %c0_4] : memref<32x1xf32, #tpu.memory_space<vmem>>, vector<32x1xf32>
    %4 = vector.broadcast %3 : vector<32x1xf32> to vector<32x32xf32>
    %5 = arith.addf %2, %4 : vector<32x32xf32>
    %cst_5 = arith.constant dense<0.000000e+00> : vector<32xf32>
    %6 = vector.multi_reduction <add>, %5, %cst_5 [1] : vector<32x32xf32> to vector<32xf32>
    %7 = vector.shape_cast %6 : vector<32xf32> to vector<32x1xf32>
    %cst_6 = arith.constant 3.200000e+01 : f32
    %8 = vector.broadcast %cst_6 : f32 to vector<32x1xf32>
    %9 = arith.divf %7, %8 : vector<32x1xf32>
    %10 = vector.broadcast %9 : vector<32x1xf32> to vector<32x32xf32>
    %11 = arith.subf %5, %10 : vector<32x32xf32>
    %12 = arith.mulf %11, %11 : vector<32x32xf32>
    %cst_7 = arith.constant dense<0.000000e+00> : vector<32xf32>
    %13 = vector.multi_reduction <add>, %12, %cst_7 [1] : vector<32x32xf32> to vector<32xf32>
    %14 = vector.shape_cast %13 : vector<32xf32> to vector<32x1xf32>
    %cst_8 = arith.constant 3.200000e+01 : f32
    %15 = vector.broadcast %cst_8 : f32 to vector<32x1xf32>
    %16 = arith.divf %14, %15 : vector<32x1xf32>
    %17 = vector.broadcast %9 : vector<32x1xf32> to vector<32x32xf32>
    %18 = arith.subf %5, %17 : vector<32x32xf32>
    %cst_9 = arith.constant 9.99999974E-6 : f32
    %19 = vector.broadcast %cst_9 : f32 to vector<32x1xf32>
    %20 = arith.addf %16, %19 : vector<32x1xf32>
    %21 = math.rsqrt %20 : vector<32x1xf32>
    %22 = vector.broadcast %21 : vector<32x1xf32> to vector<32x32xf32>
    %23 = arith.mulf %18, %22 : vector<32x32xf32>
    %c0_10 = arith.constant 0 : index
    %c0_11 = arith.constant 0 : index
    %24 = vector.load %arg4[%c0_10, %c0_11] : memref<32x1xf32, #tpu.memory_space<vmem>>, vector<32x1xf32>
    %25 = vector.broadcast %24 : vector<32x1xf32> to vector<32x32xf32>
    %26 = arith.mulf %23, %25 : vector<32x32xf32>
    %c0_12 = arith.constant 0 : index
    %c0_13 = arith.constant 0 : index
    %27 = vector.load %arg5[%c0_12, %c0_13] : memref<32x1xf32, #tpu.memory_space<vmem>>, vector<32x1xf32>
    %28 = vector.broadcast %27 : vector<32x1xf32> to vector<32x32xf32>
    %29 = arith.addf %26, %28 : vector<32x32xf32>
    %cst_14 = arith.constant 0.000000e+00 : f32
    %30 = vector.broadcast %cst_14 : f32 to vector<32x32xf32>
    %31 = arith.maximumf %29, %30 : vector<32x32xf32>
    %c0_15 = arith.constant 0 : index
    %c0_16 = arith.constant 0 : index
    %32 = vector.load %arg6[%c0_15, %c0_16] : memref<32x32xf32, #tpu.memory_space<vmem>>, vector<32x32xf32>
    tpu.vector_store %arg6[%c0_15, %c0_16], %31 {strides = array<i32>} : memref<32x32xf32, #tpu.memory_space<vmem>>, vector<32x32xf32>,
    return
  }
  func.func @transform_0(%arg0: i32) -> (i32, i32) {
    %c0_i32 = arith.constant 0 : i32
    %c0_i32_0 = arith.constant 0 : i32
    %c0_i32_1 = arith.constant 0 : i32
    return %c0_i32, %c0_i32_0 : i32, i32
  }
  func.func @transform_1(%arg0: i32) -> (i32, i32) {
    %c0_i32 = arith.constant 0 : i32
    %c0_i32_0 = arith.constant 0 : i32
    %c0_i32_1 = arith.constant 0 : i32
    return %c0_i32, %c0_i32_0 : i32, i32
  }
  func.func @transform_2(%arg0: i32) -> (i32, i32) {
    %c0_i32 = arith.constant 0 : i32
    %c0_i32_0 = arith.constant 0 : i32
    %c0_i32_1 = arith.constant 0 : i32
    return %c0_i32, %c0_i32_0 : i32, i32
  }
  func.func @transform_3(%arg0: i32) -> (i32, i32) {
    %c0_i32 = arith.constant 0 : i32
    %c0_i32_0 = arith.constant 0 : i32
    %c0_i32_1 = arith.constant 0 : i32
    return %c0_i32, %c0_i32_0 : i32, i32
  }
  func.func @transform_4(%arg0: i32) -> (i32, i32) {
    %c0_i32 = arith.constant 0 : i32
    %c0_i32_0 = arith.constant 0 : i32
    %c0_i32_1 = arith.constant 0 : i32
    return %c0_i32, %c0_i32_0 : i32, i32
  }
  func.func @transform_5(%arg0: i32) -> (i32, i32) {
    %c0_i32 = arith.constant 0 : i32
    %c0_i32_0 = arith.constant 0 : i32
    %c0_i32_1 = arith.constant 0 : i32
    return %c0_i32, %c0_i32_0 : i32, i32
  }
}

module attributes {stable_mosaic.version = 11 : i64} {
  func.func @_convt_bn_relu_kernel(%arg0: i32, %arg1: memref<16x512xf32, #tpu.memory_space<vmem>>, %arg2: memref<512x128xf32, #tpu.memory_space<vmem>>, %arg3: memref<16x1xf32, #tpu.memory_space<vmem>>, %arg4: memref<16x1xf32, #tpu.memory_space<vmem>>, %arg5: memref<16x1xf32, #tpu.memory_space<vmem>>, %arg6: memref<16x128xf32, #tpu.memory_space<vmem>>) attributes {dimension_semantics = [#tpu.dimension_semantics<arbitrary>], iteration_bounds = array<i64: 1>, scalar_prefetch = 0 : i64, scratch_operands = 0 : i64, tpu.core_type = #tpu.core_type<tc>, window_params = [{pipeline_mode = #tpu.pipeline_mode<synchronous>, transform_indices = @transform_0, window_bounds = array<i64: 16, 512>}, {pipeline_mode = #tpu.pipeline_mode<synchronous>, transform_indices = @transform_1, window_bounds = array<i64: 512, 128>}, {pipeline_mode = #tpu.pipeline_mode<synchronous>, transform_indices = @transform_2, window_bounds = array<i64: 16, 1>}, {pipeline_mode = #tpu.pipeline_mode<synchronous>, transform_indices = @transform_3, window_bounds = array<i64: 16, 1>}, {pipeline_mode = #tpu.pipeline_mode<synchronous>, transform_indices = @transform_4, window_bounds = array<i64: 16, 1>}, {pipeline_mode = #tpu.pipeline_mode<synchronous>, transform_indices = @transform_5, window_bounds = array<i64: 16, 128>}]} {
    %c0 = arith.constant 0 : index
    %c0_0 = arith.constant 0 : index
    %0 = vector.load %arg1[%c0, %c0_0] : memref<16x512xf32, #tpu.memory_space<vmem>>, vector<16x512xf32>
    %c0_1 = arith.constant 0 : index
    %c0_2 = arith.constant 0 : index
    %1 = vector.load %arg2[%c0_1, %c0_2] : memref<512x128xf32, #tpu.memory_space<vmem>>, vector<512x128xf32>
    %cst = arith.constant dense<0.000000e+00> : vector<16x128xf32>
    %2 = tpu.matmul %0, %1, %cst {dimension_numbers = #tpu.dot_dimension_numbers<[1], [0], [0], [1], [0, 0, 1, 1], [], []>} : vector<16x512xf32>, vector<512x128xf32>, vector<16x128xf32> -> vector<16x128xf32>
    %c0_3 = arith.constant 0 : index
    %c0_4 = arith.constant 0 : index
    %3 = vector.load %arg3[%c0_3, %c0_4] : memref<16x1xf32, #tpu.memory_space<vmem>>, vector<16x1xf32>
    %4 = vector.broadcast %3 : vector<16x1xf32> to vector<16x128xf32>
    %5 = arith.addf %2, %4 : vector<16x128xf32>
    %cst_5 = arith.constant dense<0.000000e+00> : vector<16xf32>
    %6 = vector.multi_reduction <add>, %5, %cst_5 [1] : vector<16x128xf32> to vector<16xf32>
    %7 = vector.shape_cast %6 : vector<16xf32> to vector<16x1xf32>
    %cst_6 = arith.constant 1.280000e+02 : f32
    %8 = vector.broadcast %cst_6 : f32 to vector<16x1xf32>
    %9 = arith.divf %7, %8 : vector<16x1xf32>
    %10 = vector.broadcast %9 : vector<16x1xf32> to vector<16x128xf32>
    %11 = arith.subf %5, %10 : vector<16x128xf32>
    %12 = arith.mulf %11, %11 : vector<16x128xf32>
    %cst_7 = arith.constant dense<0.000000e+00> : vector<16xf32>
    %13 = vector.multi_reduction <add>, %12, %cst_7 [1] : vector<16x128xf32> to vector<16xf32>
    %14 = vector.shape_cast %13 : vector<16xf32> to vector<16x1xf32>
    %cst_8 = arith.constant 1.280000e+02 : f32
    %15 = vector.broadcast %cst_8 : f32 to vector<16x1xf32>
    %16 = arith.divf %14, %15 : vector<16x1xf32>
    %17 = vector.broadcast %9 : vector<16x1xf32> to vector<16x128xf32>
    %18 = arith.subf %5, %17 : vector<16x128xf32>
    %cst_9 = arith.constant 9.99999974E-6 : f32
    %19 = vector.broadcast %cst_9 : f32 to vector<16x1xf32>
    %20 = arith.addf %16, %19 : vector<16x1xf32>
    %21 = math.rsqrt %20 : vector<16x1xf32>
    %22 = vector.broadcast %21 : vector<16x1xf32> to vector<16x128xf32>
    %23 = arith.mulf %18, %22 : vector<16x128xf32>
    %c0_10 = arith.constant 0 : index
    %c0_11 = arith.constant 0 : index
    %24 = vector.load %arg4[%c0_10, %c0_11] : memref<16x1xf32, #tpu.memory_space<vmem>>, vector<16x1xf32>
    %25 = vector.broadcast %24 : vector<16x1xf32> to vector<16x128xf32>
    %26 = arith.mulf %23, %25 : vector<16x128xf32>
    %c0_12 = arith.constant 0 : index
    %c0_13 = arith.constant 0 : index
    %27 = vector.load %arg5[%c0_12, %c0_13] : memref<16x1xf32, #tpu.memory_space<vmem>>, vector<16x1xf32>
    %28 = vector.broadcast %27 : vector<16x1xf32> to vector<16x128xf32>
    %29 = arith.addf %26, %28 : vector<16x128xf32>
    %cst_14 = arith.constant 0.000000e+00 : f32
    %30 = vector.broadcast %cst_14 : f32 to vector<16x128xf32>
    %31 = arith.maximumf %29, %30 : vector<16x128xf32>
    %c0_15 = arith.constant 0 : index
    %c0_16 = arith.constant 0 : index
    %32 = vector.load %arg6[%c0_15, %c0_16] : memref<16x128xf32, #tpu.memory_space<vmem>>, vector<16x128xf32>
    tpu.vector_store %arg6[%c0_15, %c0_16], %31 {strides = array<i32>} : memref<16x128xf32, #tpu.memory_space<vmem>>, vector<16x128xf32>,
    return
  }
  func.func @transform_0(%arg0: i32) -> (i32, i32) {
    %c0_i32 = arith.constant 0 : i32
    %c0_i32_0 = arith.constant 0 : i32
    %c0_i32_1 = arith.constant 0 : i32
    return %c0_i32, %c0_i32_0 : i32, i32
  }
  func.func @transform_1(%arg0: i32) -> (i32, i32) {
    %c0_i32 = arith.constant 0 : i32
    %c0_i32_0 = arith.constant 0 : i32
    %c0_i32_1 = arith.constant 0 : i32
    return %c0_i32, %c0_i32_0 : i32, i32
  }
  func.func @transform_2(%arg0: i32) -> (i32, i32) {
    %c0_i32 = arith.constant 0 : i32
    %c0_i32_0 = arith.constant 0 : i32
    %c0_i32_1 = arith.constant 0 : i32
    return %c0_i32, %c0_i32_0 : i32, i32
  }
  func.func @transform_3(%arg0: i32) -> (i32, i32) {
    %c0_i32 = arith.constant 0 : i32
    %c0_i32_0 = arith.constant 0 : i32
    %c0_i32_1 = arith.constant 0 : i32
    return %c0_i32, %c0_i32_0 : i32, i32
  }
  func.func @transform_4(%arg0: i32) -> (i32, i32) {
    %c0_i32 = arith.constant 0 : i32
    %c0_i32_0 = arith.constant 0 : i32
    %c0_i32_1 = arith.constant 0 : i32
    return %c0_i32, %c0_i32_0 : i32, i32
  }
  func.func @transform_5(%arg0: i32) -> (i32, i32) {
    %c0_i32 = arith.constant 0 : i32
    %c0_i32_0 = arith.constant 0 : i32
    %c0_i32_1 = arith.constant 0 : i32
    return %c0_i32, %c0_i32_0 : i32, i32
  }
}

module attributes {stable_mosaic.version = 11 : i64} {
  func.func @_convt_bn_relu_kernel(%arg0: i32, %arg1: memref<8x256xf32, #tpu.memory_space<vmem>>, %arg2: memref<256x512xf32, #tpu.memory_space<vmem>>, %arg3: memref<8x1xf32, #tpu.memory_space<vmem>>, %arg4: memref<8x1xf32, #tpu.memory_space<vmem>>, %arg5: memref<8x1xf32, #tpu.memory_space<vmem>>, %arg6: memref<8x512xf32, #tpu.memory_space<vmem>>) attributes {dimension_semantics = [#tpu.dimension_semantics<arbitrary>], iteration_bounds = array<i64: 1>, scalar_prefetch = 0 : i64, scratch_operands = 0 : i64, tpu.core_type = #tpu.core_type<tc>, window_params = [{pipeline_mode = #tpu.pipeline_mode<synchronous>, transform_indices = @transform_0, window_bounds = array<i64: 8, 256>}, {pipeline_mode = #tpu.pipeline_mode<synchronous>, transform_indices = @transform_1, window_bounds = array<i64: 256, 512>}, {pipeline_mode = #tpu.pipeline_mode<synchronous>, transform_indices = @transform_2, window_bounds = array<i64: 8, 1>}, {pipeline_mode = #tpu.pipeline_mode<synchronous>, transform_indices = @transform_3, window_bounds = array<i64: 8, 1>}, {pipeline_mode = #tpu.pipeline_mode<synchronous>, transform_indices = @transform_4, window_bounds = array<i64: 8, 1>}, {pipeline_mode = #tpu.pipeline_mode<synchronous>, transform_indices = @transform_5, window_bounds = array<i64: 8, 512>}]} {
    %c0 = arith.constant 0 : index
    %c0_0 = arith.constant 0 : index
    %0 = vector.load %arg1[%c0, %c0_0] : memref<8x256xf32, #tpu.memory_space<vmem>>, vector<8x256xf32>
    %c0_1 = arith.constant 0 : index
    %c0_2 = arith.constant 0 : index
    %1 = vector.load %arg2[%c0_1, %c0_2] : memref<256x512xf32, #tpu.memory_space<vmem>>, vector<256x512xf32>
    %cst = arith.constant dense<0.000000e+00> : vector<8x512xf32>
    %2 = tpu.matmul %0, %1, %cst {dimension_numbers = #tpu.dot_dimension_numbers<[1], [0], [0], [1], [0, 0, 1, 1], [], []>} : vector<8x256xf32>, vector<256x512xf32>, vector<8x512xf32> -> vector<8x512xf32>
    %c0_3 = arith.constant 0 : index
    %c0_4 = arith.constant 0 : index
    %3 = vector.load %arg3[%c0_3, %c0_4] : memref<8x1xf32, #tpu.memory_space<vmem>>, vector<8x1xf32>
    %4 = vector.broadcast %3 : vector<8x1xf32> to vector<8x512xf32>
    %5 = arith.addf %2, %4 : vector<8x512xf32>
    %cst_5 = arith.constant dense<0.000000e+00> : vector<8xf32>
    %6 = vector.multi_reduction <add>, %5, %cst_5 [1] : vector<8x512xf32> to vector<8xf32>
    %7 = vector.shape_cast %6 : vector<8xf32> to vector<8x1xf32>
    %cst_6 = arith.constant 5.120000e+02 : f32
    %8 = vector.broadcast %cst_6 : f32 to vector<8x1xf32>
    %9 = arith.divf %7, %8 : vector<8x1xf32>
    %10 = vector.broadcast %9 : vector<8x1xf32> to vector<8x512xf32>
    %11 = arith.subf %5, %10 : vector<8x512xf32>
    %12 = arith.mulf %11, %11 : vector<8x512xf32>
    %cst_7 = arith.constant dense<0.000000e+00> : vector<8xf32>
    %13 = vector.multi_reduction <add>, %12, %cst_7 [1] : vector<8x512xf32> to vector<8xf32>
    %14 = vector.shape_cast %13 : vector<8xf32> to vector<8x1xf32>
    %cst_8 = arith.constant 5.120000e+02 : f32
    %15 = vector.broadcast %cst_8 : f32 to vector<8x1xf32>
    %16 = arith.divf %14, %15 : vector<8x1xf32>
    %17 = vector.broadcast %9 : vector<8x1xf32> to vector<8x512xf32>
    %18 = arith.subf %5, %17 : vector<8x512xf32>
    %cst_9 = arith.constant 9.99999974E-6 : f32
    %19 = vector.broadcast %cst_9 : f32 to vector<8x1xf32>
    %20 = arith.addf %16, %19 : vector<8x1xf32>
    %21 = math.rsqrt %20 : vector<8x1xf32>
    %22 = vector.broadcast %21 : vector<8x1xf32> to vector<8x512xf32>
    %23 = arith.mulf %18, %22 : vector<8x512xf32>
    %c0_10 = arith.constant 0 : index
    %c0_11 = arith.constant 0 : index
    %24 = vector.load %arg4[%c0_10, %c0_11] : memref<8x1xf32, #tpu.memory_space<vmem>>, vector<8x1xf32>
    %25 = vector.broadcast %24 : vector<8x1xf32> to vector<8x512xf32>
    %26 = arith.mulf %23, %25 : vector<8x512xf32>
    %c0_12 = arith.constant 0 : index
    %c0_13 = arith.constant 0 : index
    %27 = vector.load %arg5[%c0_12, %c0_13] : memref<8x1xf32, #tpu.memory_space<vmem>>, vector<8x1xf32>
    %28 = vector.broadcast %27 : vector<8x1xf32> to vector<8x512xf32>
    %29 = arith.addf %26, %28 : vector<8x512xf32>
    %cst_14 = arith.constant 0.000000e+00 : f32
    %30 = vector.broadcast %cst_14 : f32 to vector<8x512xf32>
    %31 = arith.maximumf %29, %30 : vector<8x512xf32>
    %c0_15 = arith.constant 0 : index
    %c0_16 = arith.constant 0 : index
    %32 = vector.load %arg6[%c0_15, %c0_16] : memref<8x512xf32, #tpu.memory_space<vmem>>, vector<8x512xf32>
    tpu.vector_store %arg6[%c0_15, %c0_16], %31 {strides = array<i32>} : memref<8x512xf32, #tpu.memory_space<vmem>>, vector<8x512xf32>,
    return
  }
  func.func @transform_0(%arg0: i32) -> (i32, i32) {
    %c0_i32 = arith.constant 0 : i32
    %c0_i32_0 = arith.constant 0 : i32
    %c0_i32_1 = arith.constant 0 : i32
    return %c0_i32, %c0_i32_0 : i32, i32
  }
  func.func @transform_1(%arg0: i32) -> (i32, i32) {
    %c0_i32 = arith.constant 0 : i32
    %c0_i32_0 = arith.constant 0 : i32
    %c0_i32_1 = arith.constant 0 : i32
    return %c0_i32, %c0_i32_0 : i32, i32
  }
  func.func @transform_2(%arg0: i32) -> (i32, i32) {
    %c0_i32 = arith.constant 0 : i32
    %c0_i32_0 = arith.constant 0 : i32
    %c0_i32_1 = arith.constant 0 : i32
    return %c0_i32, %c0_i32_0 : i32, i32
  }
  func.func @transform_3(%arg0: i32) -> (i32, i32) {
    %c0_i32 = arith.constant 0 : i32
    %c0_i32_0 = arith.constant 0 : i32
    %c0_i32_1 = arith.constant 0 : i32
    return %c0_i32, %c0_i32_0 : i32, i32
  }
  func.func @transform_4(%arg0: i32) -> (i32, i32) {
    %c0_i32 = arith.constant 0 : i32
    %c0_i32_0 = arith.constant 0 : i32
    %c0_i32_1 = arith.constant 0 : i32
    return %c0_i32, %c0_i32_0 : i32, i32
  }
  func.func @transform_5(%arg0: i32) -> (i32, i32) {
    %c0_i32 = arith.constant 0 : i32
    %c0_i32_0 = arith.constant 0 : i32
    %c0_i32_1 = arith.constant 0 : i32
    return %c0_i32, %c0_i32_0 : i32, i32
  }
}

module attributes {stable_mosaic.version = 11 : i64} {
  func.func @_convt_tanh_kernel(%arg0: i32, %arg1: memref<1x128xf32, #tpu.memory_space<vmem>>, %arg2: memref<128x1568xf32, #tpu.memory_space<vmem>>, %arg3: memref<1x1xf32, #tpu.memory_space<vmem>>, %arg4: memref<1x1568xf32, #tpu.memory_space<vmem>>) attributes {dimension_semantics = [#tpu.dimension_semantics<arbitrary>], iteration_bounds = array<i64: 1>, scalar_prefetch = 0 : i64, scratch_operands = 0 : i64, tpu.core_type = #tpu.core_type<tc>, window_params = [{pipeline_mode = #tpu.pipeline_mode<synchronous>, transform_indices = @transform_0, window_bounds = array<i64: 1, 128>}, {pipeline_mode = #tpu.pipeline_mode<synchronous>, transform_indices = @transform_1, window_bounds = array<i64: 128, 1568>}, {pipeline_mode = #tpu.pipeline_mode<synchronous>, transform_indices = @transform_2, window_bounds = array<i64: 1, 1>}, {pipeline_mode = #tpu.pipeline_mode<synchronous>, transform_indices = @transform_3, window_bounds = array<i64: 1, 1568>}]} {
    %c0 = arith.constant 0 : index
    %c0_0 = arith.constant 0 : index
    %0 = vector.load %arg1[%c0, %c0_0] : memref<1x128xf32, #tpu.memory_space<vmem>>, vector<1x128xf32>
    %c0_1 = arith.constant 0 : index
    %c0_2 = arith.constant 0 : index
    %1 = vector.load %arg2[%c0_1, %c0_2] : memref<128x1568xf32, #tpu.memory_space<vmem>>, vector<128x1568xf32>
    %cst = arith.constant dense<0.000000e+00> : vector<1x1568xf32>
    %2 = tpu.matmul %0, %1, %cst {dimension_numbers = #tpu.dot_dimension_numbers<[1], [0], [0], [1], [0, 0, 1, 1], [], []>} : vector<1x128xf32>, vector<128x1568xf32>, vector<1x1568xf32> -> vector<1x1568xf32>
    %c0_3 = arith.constant 0 : index
    %c0_4 = arith.constant 0 : index
    %3 = vector.load %arg3[%c0_3, %c0_4] : memref<1x1xf32, #tpu.memory_space<vmem>>, vector<1x1xf32>
    %4 = vector.broadcast %3 : vector<1x1xf32> to vector<1x1568xf32>
    %5 = arith.addf %2, %4 : vector<1x1568xf32>
    %6 = math.tanh %5 : vector<1x1568xf32>
    %c0_5 = arith.constant 0 : index
    %c0_6 = arith.constant 0 : index
    %7 = vector.load %arg4[%c0_5, %c0_6] : memref<1x1568xf32, #tpu.memory_space<vmem>>, vector<1x1568xf32>
    tpu.vector_store %arg4[%c0_5, %c0_6], %6 {strides = array<i32>} : memref<1x1568xf32, #tpu.memory_space<vmem>>, vector<1x1568xf32>,
    return
  }
  func.func @transform_0(%arg0: i32) -> (i32, i32) {
    %c0_i32 = arith.constant 0 : i32
    %c0_i32_0 = arith.constant 0 : i32
    %c0_i32_1 = arith.constant 0 : i32
    return %c0_i32, %c0_i32_0 : i32, i32
  }
  func.func @transform_1(%arg0: i32) -> (i32, i32) {
    %c0_i32 = arith.constant 0 : i32
    %c0_i32_0 = arith.constant 0 : i32
    %c0_i32_1 = arith.constant 0 : i32
    return %c0_i32, %c0_i32_0 : i32, i32
  }
  func.func @transform_2(%arg0: i32) -> (i32, i32) {
    %c0_i32 = arith.constant 0 : i32
    %c0_i32_0 = arith.constant 0 : i32
    %c0_i32_1 = arith.constant 0 : i32
    return %c0_i32, %c0_i32_0 : i32, i32
  }
  func.func @transform_3(%arg0: i32) -> (i32, i32) {
    %c0_i32 = arith.constant 0 : i32
    %c0_i32_0 = arith.constant 0 : i32
    %c0_i32_1 = arith.constant 0 : i32
    return %c0_i32, %c0_i32_0 : i32, i32
  }
}

</mosaic_0001>

<bundles_post_ra>
// kernel: generator_forward.4
= control target key start
LH: loop header
LB: loop body
LE: loop exit
PB: predicated region body
PF: predicated region fallthrough
CT: control target
= control target key end

     0   :  { %v388_v3 = vmov 0   ;;  %vm149_vm0 = vcmask 261120   ;;  %s539_s1 = inlined_call_operand.vmem [shape: f32[128,32], index: 1, kind: input, shape index: {}]   ;;  %s540_s0 = inlined_call_operand.vmem [shape: f32[32,128], index: 0, kind: input, shape index: {}]   ;;  %s541_s2 = inlined_call_operand.vmem [shape: f32[32,1], index: 2, kind: input, shape index: {}]   ;;  %s542_s3 = inlined_call_operand.vmem [shape: f32[32,1], index: 3, kind: input, shape index: {}]   ;;  %s543_s4 = inlined_call_operand.vmem [shape: f32[32,1], index: 4, kind: input, shape index: {}]   ;;  %s544_s5 = inlined_call_operand.vmem [shape: f32[32,32], index: 5, kind: output, shape index: {}]  }
   0x1   :  { %v24_v0 = vld [vmem:[%s539_s1] sm:$0xff]  ;;  %v25_v1 = vld [vmem:[%s539_s1 + $0x8] sm:$0xff]  ;;  %v26_v2 = vld [vmem:[%s539_s1 + $0x10] sm:$0xff]  ;;  %378 = vset.pattern.permute.xlu0 %v388_v3  ;;  %379 = vset.pattern.permute.xlu1 %v388_v3 }
   0x2   :  { %v329_v4 = vpack.c.bf16 %v25_v1, %v24_v0  ;;  %v27_v5 = vld [vmem:[%s539_s1 + $0x18] sm:$0xff]  ;;  %v28_v7 = vld [vmem:[%s539_s1 + $0x20] sm:$0xff]  ;;  %v29_v8 = vld [vmem:[%s539_s1 + $0x28] sm:$0xff] }
   0x3   :  { %v333_v6 = vpack.c.bf16 %v27_v5, %v26_v2  ;;  %v337_v9 = vpack.c.bf16 %v29_v8, %v28_v7  ;;  %v30_v10 = vld [vmem:[%s539_s1 + $0x30] sm:$0xff]  ;;  %v20_v11 = vld [vmem:[%s540_s0] sm:$0xff]  ;;  %v31_v12 = vld [vmem:[%s539_s1 + $0x38] sm:$0xff] }
   0x4   :  { %330 = vmatprep.subr.bf16.mxu0 %v329_v4  ;;  %361 = vmatprep.subr.bf16.mxu1 %v329_v4  ;;  %v22_v13 = vld [vmem:[%s540_s0 + $0x10] sm:$0xff]  ;;  %v40_v14 = vld [vmem:[%s541_s2] sm:$0xff]  ;;  %v41_v16 = vld [vmem:[%s541_s2 + $0x8] sm:$0xff]  ;;  %v341_v17 = vpack.c.bf16 %v31_v12, %v30_v10 }
   0x5   :  { %332 = vmatpush3.bf16.msra.mxu0 %v329_v4  ;;  %369 = vmatpush3.bf16.msra.mxu1 %v329_v4  ;;  %v42_v15 = vld [vmem:[%s541_s2 + $0x10] sm:$0xff]  ;;  %v32_v18 = vld [vmem:[%s539_s1 + $0x40] sm:$0xff]  ;;  %v33_v19 = vld [vmem:[%s539_s1 + $0x48] sm:$0xff] }
   0x6   :  { %334 = vmatprep.subr.bf16.mxu0 %v333_v6  ;;  %362 = vmatprep.subr.bf16.mxu1 %v333_v6  ;;  %v43_v20 = vld [vmem:[%s541_s2 + $0x18] sm:$0xff]  ;;  %v345_v21 = vpack.c.bf16 %v33_v19, %v32_v18  ;;  %v34_v22 = vld [vmem:[%s539_s1 + $0x50] sm:$0xff]  ;;  %v36_v25 = vld [vmem:[%s539_s1 + $0x60] sm:$0xff] }
   0x7   :  { %323 = vmatprep.mubr.f32.mxu0 %v20_v11  ;;  %326 = vmatprep.mubr.f32.mxu1 %v22_v13  ;;  %v35_v23 = vld [vmem:[%s539_s1 + $0x58] sm:$0xff]  ;;  %v37_v26 = vld [vmem:[%s539_s1 + $0x68] sm:$0xff]  ;;  %v38_v28 = vld [vmem:[%s539_s1 + $0x70] sm:$0xff] }
   0x8   :  { %46 = vperm.xlu0 %378, %v40_v14   ;;  %56 = vperm.xlu1 %379, %v42_v15   ;;  %v349_v24 = vpack.c.bf16 %v35_v23, %v34_v22  ;;  %v353_v27 = vpack.c.bf16 %v37_v26, %v36_v25  ;;  %v39_v29 = vld [vmem:[%s539_s1 + $0x78] sm:$0xff]  ;;  %v21_v31 = vld [vmem:[%s540_s0 + $0x8] sm:$0xff]  ;;  %v203_v49 = vld [vmem:[%s542_s3] sm:$0xff] }
   0x9   :  { %336 = vmatpush3.bf16.msra.mxu0 %v333_v6  ;;  %370 = vmatpush3.bf16.msra.mxu1 %v333_v6  ;;  %v357_v30 = vpack.c.bf16 %v39_v29, %v38_v28  ;;  %v23_v32 = vld [vmem:[%s540_s0 + $0x18] sm:$0xff]  ;;  %v205_v50 = vld [vmem:[%s542_s3 + $0x10] sm:$0xff]  ;;  %v232_v52 = vld [vmem:[%s543_s4 + $0x8] sm:$0xff] }
   0xa   :  { %338 = vmatprep.subr.bf16.mxu0 %v337_v9  ;;  %363 = vmatprep.subr.bf16.mxu1 %v337_v9  ;;  %v206_v51 = vld [vmem:[%s542_s3 + $0x18] sm:$0xff]  ;;  %v204_v53 = vld [vmem:[%s542_s3 + $0x8] sm:$0xff]  ;;  %v231_v54 = vld [vmem:[%s543_s4] sm:$0xff] }
   0xb   :  { %v234_v11 = vld [vmem:[%s543_s4 + $0x18] sm:$0xff]  ;;  %v233_v12 = vld [vmem:[%s543_s4 + $0x10] sm:$0xff] }
   0xc   :  { %51 = vperm.xlu0 %378, %v41_v16   ;;  %61 = vperm.xlu1 %379, %v43_v20  }
   0xd   :  { %340 = vmatpush3.bf16.msra.mxu0 %v337_v9  ;;  %371 = vmatpush3.bf16.msra.mxu1 %v337_v9 }
   0xe   :  { %342 = vmatprep.subr.bf16.mxu0 %v341_v17  ;;  %364 = vmatprep.subr.bf16.mxu1 %v341_v17 }
  0x11   :  { %344 = vmatpush3.bf16.msra.mxu0 %v341_v17  ;;  %372 = vmatpush3.bf16.msra.mxu1 %v341_v17 }
  0x12   :  { %346 = vmatprep.subr.bf16.mxu0 %v345_v21  ;;  %365 = vmatprep.subr.bf16.mxu1 %v345_v21 }
  0x15   :  { %348 = vmatpush3.bf16.msra.mxu0 %v345_v21  ;;  %373 = vmatpush3.bf16.msra.mxu1 %v345_v21 }
  0x16   :  { %350 = vmatprep.subr.bf16.mxu0 %v349_v24  ;;  %366 = vmatprep.subr.bf16.mxu1 %v349_v24 }
  0x19   :  { %352 = vmatpush3.bf16.msra.mxu0 %v349_v24  ;;  %374 = vmatpush3.bf16.msra.mxu1 %v349_v24 }
  0x1a   :  { %354 = vmatprep.subr.bf16.mxu0 %v353_v27  ;;  %367 = vmatprep.subr.bf16.mxu1 %v353_v27 }
  0x1d   :  { %356 = vmatpush3.bf16.msra.mxu0 %v353_v27  ;;  %375 = vmatpush3.bf16.msra.mxu1 %v353_v27 }
  0x1e   :  { %358 = vmatprep.subr.bf16.mxu0 %v357_v30  ;;  %368 = vmatprep.subr.bf16.mxu1 %v357_v30 }
  0x21   :  { %360 = vmatpush3.bf16.msra.mxu0 %v357_v30  ;;  %376 = vmatpush3.bf16.msra.mxu1 %v357_v30 }
  0x24   :  { %324 = vmatmul.mubr.f32.vlgmr.msra.gmra.mrb[0].mxu0 %v21_v31  ;;  %327 = vmatmul.mubr.f32.vlgmr.msra.gmra.mrb[0].mxu1 %v23_v32 }
  0x87   :  { %v47_v33 = vpop.permute.xlu0 %46  ;;  %v57_v35 = vpop.permute.xlu1 %56 }
  0x8b   :  { %v52_v34 = vpop.permute.xlu0 %51  ;;  %v62_v45 = vpop.permute.xlu1 %61 }
  0xf7   :  { %v325_v36 = vpop.f32.mrb[0].mxu0  ;;  %v328_v37 = vpop.f32.mrb[0].mxu1 }
  0xf8   :  { %v136_v38 = vadd.f32 %v325_v36, %v52_v34  ;;  %v130_v39 = vpop.f32.mrb[1].mxu0  ;;  %v140_v40 = vpop.f32.mrb[1].mxu1  ;;  %v146_v47 = vadd.f32 %v328_v37, %v62_v45 }
  0xf9   :  { %v131_v41 = vadd.f32 %v130_v39, %v47_v33  ;;  %v141_v42 = vadd.f32 %v140_v40, %v57_v35 }
  0xfa   :  { %v153_v43 = vsel %vm149_vm0, %v136_v38, 0.0  ;;  %v159_v48 = vsel %vm149_vm0, %v146_v47, 0.0 }
  0xfb   :  { %154 = vadd.xlane.f32.xlu1 %v153_v43  ;;  %v150_v44 = vsel %vm149_vm0, %v131_v41, 0.0  ;;  %v156_v46 = vsel %vm149_vm0, %v141_v42, 0.0 }
  0xfc   :  { %151 = vadd.xlane.f32.xlu0 %v150_v44 }
 0x100   :  { %157 = vadd.xlane.f32.xlu0 %v156_v46 }
 0x104   :  { %160 = vadd.xlane.f32.xlu0 %v159_v48 }
 0x10c   :  { %209 = vperm.xlu1 %379, %v203_v49  }
 0x110   :  { %219 = vperm.xlu1 %379, %v205_v50  }
 0x114   :  { %224 = vperm.xlu1 %379, %v206_v51  }
 0x118   :  { %242 = vperm.xlu1 %379, %v232_v52  }
 0x11a   :  { %214 = vperm.xlu0 %378, %v204_v53  }
 0x11e   :  { %237 = vperm.xlu0 %378, %v231_v54  }
 0x188   :  { %v155_v55 = vpop.xlane.xlu1 %154 }
 0x189   :  { %v164_v56 = vmul.f32 0.03125, %v155_v55  ;;  %v152_v57 = vpop.xlane.xlu0 %151 }
 0x18a   :  { %v163_v58 = vmul.f32 0.03125, %v152_v57 }
 0x18b   :  { %v168_v59 = vsub.f32 %v136_v38, %v164_v56 }
 0x18c   :  { %v167_v60 = vsub.f32 %v131_v41, %v163_v58  ;;  %v210_v13 = vpop.permute.xlu1 %209 }
 0x18d   :  { %v158_v61 = vpop.xlane.xlu0 %157  ;;  %v172_v62 = vmul.f32 %v168_v59, %v168_v59 }
 0x18e   :  { %v165_v63 = vmul.f32 0.03125, %v158_v61  ;;  %v171_v0 = vmul.f32 %v167_v60, %v167_v60 }
 0x18f   :  { %v178_v1 = vsel %vm149_vm0, %v172_v62, 0.0 }
 0x190   :  { %v169_v2 = vsub.f32 %v141_v42, %v165_v63  ;;  %179 = vadd.xlane.f32.xlu0 %v178_v1  ;;  %v175_v3 = vsel %vm149_vm0, %v171_v0, 0.0  ;;  %v220_v14 = vpop.permute.xlu1 %219 }
 0x191   :  { %176 = vadd.xlane.f32.xlu1 %v175_v3  ;;  %v161_v4 = vpop.xlane.xlu0 %160 }
 0x192   :  { %v166_v5 = vmul.f32 0.03125, %v161_v4  ;;  %v173_v6 = vmul.f32 %v169_v2, %v169_v2 }
 0x194   :  { %v170_v7 = vsub.f32 %v146_v47, %v166_v5  ;;  %v181_v8 = vsel %vm149_vm0, %v173_v6, 0.0  ;;  %v225_v16 = vpop.permute.xlu1 %224 }
 0x195   :  { %182 = vadd.xlane.f32.xlu1 %v181_v8 }
 0x196   :  { %v174_v9 = vmul.f32 %v170_v7, %v170_v7 }
 0x198   :  { %v184_v10 = vsel %vm149_vm0, %v174_v9, 0.0  ;;  %v243_v18 = vpop.permute.xlu1 %242 }
 0x199   :  { %185 = vadd.xlane.f32.xlu0 %v184_v10  ;;  %v215_v15 = vpop.permute.xlu0 %214 }
 0x19d   :  { %v238_v17 = vpop.permute.xlu0 %237 }
 0x1a6   :  { %252 = vperm.xlu1 %379, %v234_v11  }
 0x1af   :  { %247 = vperm.xlu0 %378, %v233_v12  }
 0x21d   :  { %v180_v19 = vpop.xlane.xlu0 %179 }
 0x21e   :  { %v188_v20 = vmul.f32 0.03125, %v180_v19  ;;  %v177_v21 = vpop.xlane.xlu1 %176 }
 0x21f   :  { %v187_v22 = vmul.f32 0.03125, %v177_v21 }
 0x220   :  { %v192_v23 = vadd.f32 1e-05, %v188_v20 }
 0x221   :  { %v191_v24 = vadd.f32 1e-05, %v187_v22 }
 0x222   :  { %380 = vrsqrt.f32 %v192_v23  ;;  %v183_v25 = vpop.xlane.xlu1 %182 }
 0x223   :  { %382 = vrsqrt.f32 %v191_v24  ;;  %v189_v26 = vmul.f32 0.03125, %v183_v25 }
 0x225   :  { %v193_v27 = vadd.f32 1e-05, %v189_v26 }
 0x226   :  { %v186_v28 = vpop.xlane.xlu0 %185  ;;  %v253_v50 = vpop.permute.xlu1 %252 }
 0x227   :  { %384 = vrsqrt.f32 %v193_v27  ;;  %v190_v29 = vmul.f32 0.03125, %v186_v28 }
 0x229   :  { %v194_v30 = vadd.f32 1e-05, %v190_v29 }
 0x22b   :  { %386 = vrsqrt.f32 %v194_v30 }
 0x22c   :  { %v381_v31 = vpop.eup %380 }
 0x22d   :  { %v383_v32 = vpop.eup %382  ;;  %v200_v33 = vmul.f32 %v381_v31, %v168_v59 }
 0x22e   :  { %v199_v34 = vmul.f32 %v383_v32, %v167_v60  ;;  %v248_v45 = vpop.permute.xlu0 %247 }
 0x22f   :  { %v228_v35 = vmul.f32 %v215_v15, %v200_v33 }
 0x230   :  { %v227_v36 = vmul.f32 %v210_v13, %v199_v34 }
 0x231   :  { %v385_v37 = vpop.eup %384  ;;  %v256_v38 = vadd.f32 %v243_v18, %v228_v35 }
 0x232   :  { %v255_v39 = vadd.f32 %v238_v17, %v227_v36  ;;  %v201_v40 = vmul.f32 %v385_v37, %v169_v2 }
 0x233   :  { %v260_v41 = vmax.f32 %v256_v38, 0.0 }
 0x234   :  { %v259_v42 = vmax.f32 %v255_v39, 0.0  ;;  %v229_v43 = vmul.f32 %v220_v14, %v201_v40 }
 0x235   :  { %v387_v44 = vpop.eup %386  ;;  %264 = vst.msk [vmem:[%s544_s5 + $0x8] sm:$0xff] %vm149_vm0, %v260_v41 }
 0x236   :  { %v202_v46 = vmul.f32 %v387_v44, %v170_v7  ;;  %263 = vst.msk [vmem:[%s544_s5] sm:$0xff] %vm149_vm0, %v259_v42  ;;  %v257_v47 = vadd.f32 %v248_v45, %v229_v43 }
 0x238   :  { %v230_v48 = vmul.f32 %v225_v16, %v202_v46  ;;  %v261_v49 = vmax.f32 %v257_v47, 0.0 }
 0x23a   :  { %v258_v51 = vadd.f32 %v253_v50, %v230_v48  ;;  %265 = vst.msk [vmem:[%s544_s5 + $0x10] sm:$0xff] %vm149_vm0, %v261_v49 }
 0x23c   :  { %v262_v52 = vmax.f32 %v258_v51, 0.0 }
 0x23e   :  { %266 = vst.msk [vmem:[%s544_s5 + $0x18] sm:$0xff] %vm149_vm0, %v262_v52 }

// kernel: generator_forward.5
= control target key start
LH: loop header
LB: loop body
LE: loop exit
PB: predicated region body
PF: predicated region fallthrough
CT: control target
= control target key end

     0   :  { %v460_v3 = vmov 0   ;;  %s731_s1 = inlined_call_operand.vmem [shape: f32[512,128], index: 1, kind: input, shape index: {}]   ;;  %s732_s0 = inlined_call_operand.vmem [shape: f32[16,512], index: 0, kind: input, shape index: {}]   ;;  %s733_s2 = inlined_call_operand.vmem [shape: f32[16,1], index: 2, kind: input, shape index: {}]   ;;  %s734_s3 = inlined_call_operand.vmem [shape: f32[16,1], index: 3, kind: input, shape index: {}]   ;;  %s735_s4 = inlined_call_operand.vmem [shape: f32[16,1], index: 4, kind: input, shape index: {}]   ;;  %s736_s5 = inlined_call_operand.vmem [shape: f32[16,128], index: 5, kind: output, shape index: {}]  }
   0x1   :  { %v44_v0 = vld [vmem:[%s731_s1 + $0x80] sm:$0xff]  ;;  %v45_v1 = vld [vmem:[%s731_s1 + $0x88] sm:$0xff]  ;;  %454 = vset.pattern.permute.xlu0 %v460_v3  ;;  %455 = vset.pattern.permute.xlu1 %v460_v3  ;;  %v46_v12 = vld [vmem:[%s731_s1 + $0x90] sm:$0xff] }
   0x2   :  { %v28_v2 = vld [vmem:[%s731_s1] sm:$0xff]  ;;  %v389_v4 = vpack.c.bf16 %v45_v1, %v44_v0  ;;  %v29_v5 = vld [vmem:[%s731_s1 + $0x8] sm:$0xff]  ;;  %v47_v14 = vld [vmem:[%s731_s1 + $0x98] sm:$0xff] }
   0x3   :  { %v76_v6 = vld [vmem:[%s731_s1 + $0x180] sm:$0xff]  ;;  %v77_v7 = vld [vmem:[%s731_s1 + $0x188] sm:$0xff]  ;;  %v391_v8 = vpack.c.bf16 %v29_v5, %v28_v2  ;;  %v30_v15 = vld [vmem:[%s731_s1 + $0x10] sm:$0xff]  ;;  %v393_v17 = vpack.c.bf16 %v47_v14, %v46_v12 }
   0x4   :  { %v421_v9 = vpack.c.bf16 %v77_v7, %v76_v6  ;;  %v60_v10 = vld [vmem:[%s731_s1 + $0x100] sm:$0xff]  ;;  %v61_v11 = vld [vmem:[%s731_s1 + $0x108] sm:$0xff]  ;;  %390 = vmatprep.subr.bf16.mxu0 %v389_v4  ;;  %v31_v16 = vld [vmem:[%s731_s1 + $0x18] sm:$0xff] }
   0x5   :  { %v423_v13 = vpack.c.bf16 %v61_v11, %v60_v10  ;;  %392 = vmatpush3.bf16.msra.mxu0 %v391_v8  ;;  %v395_v18 = vpack.c.bf16 %v31_v16, %v30_v15  ;;  %v78_v19 = vld [vmem:[%s731_s1 + $0x190] sm:$0xff]  ;;  %v79_v20 = vld [vmem:[%s731_s1 + $0x198] sm:$0xff]  ;;  %v48_v24 = vld [vmem:[%s731_s1 + $0xa0] sm:$0xff] }
   0x6   :  { %422 = vmatprep.subr.bf16.mxu1 %v421_v9  ;;  %v62_v21 = vld [vmem:[%s731_s1 + $0x110] sm:$0xff]  ;;  %v425_v22 = vpack.c.bf16 %v79_v20, %v78_v19  ;;  %v63_v23 = vld [vmem:[%s731_s1 + $0x118] sm:$0xff]  ;;  %v49_v25 = vld [vmem:[%s731_s1 + $0xa8] sm:$0xff]  ;;  %394 = vmatprep.subr.bf16.mxu0 %v393_v17 }
   0x7   :  { %424 = vmatpush3.bf16.msra.mxu1 %v423_v13  ;;  %v427_v26 = vpack.c.bf16 %v63_v23, %v62_v21  ;;  %v397_v27 = vpack.c.bf16 %v49_v25, %v48_v24  ;;  %v32_v28 = vld [vmem:[%s731_s1 + $0x20] sm:$0xff]  ;;  %v33_v29 = vld [vmem:[%s731_s1 + $0x28] sm:$0xff]  ;;  %v50_v36 = vld [vmem:[%s731_s1 + $0xb0] sm:$0xff] }
   0x8   :  { %v80_v30 = vld [vmem:[%s731_s1 + $0x1a0] sm:$0xff]  ;;  %426 = vmatprep.subr.bf16.mxu1 %v425_v22  ;;  %v81_v31 = vld [vmem:[%s731_s1 + $0x1a8] sm:$0xff]  ;;  %v399_v34 = vpack.c.bf16 %v33_v29, %v32_v28  ;;  %v51_v37 = vld [vmem:[%s731_s1 + $0xb8] sm:$0xff] }
   0x9   :  { %v64_v32 = vld [vmem:[%s731_s1 + $0x120] sm:$0xff]  ;;  %v65_v33 = vld [vmem:[%s731_s1 + $0x128] sm:$0xff]  ;;  %396 = vmatpush3.bf16.msra.mxu0 %v395_v18  ;;  %v429_v35 = vpack.c.bf16 %v81_v31, %v80_v30  ;;  %v34_v38 = vld [vmem:[%s731_s1 + $0x30] sm:$0xff]  ;;  %v401_v40 = vpack.c.bf16 %v51_v37, %v50_v36 }
   0xa   :  { %398 = vmatprep.subr.bf16.mxu0 %v397_v27  ;;  %v431_v39 = vpack.c.bf16 %v65_v33, %v64_v32  ;;  %v35_v41 = vld [vmem:[%s731_s1 + $0x38] sm:$0xff]  ;;  %v82_v42 = vld [vmem:[%s731_s1 + $0x1b0] sm:$0xff]  ;;  %v52_v47 = vld [vmem:[%s731_s1 + $0xc0] sm:$0xff] }
   0xb   :  { %428 = vmatpush3.bf16.msra.mxu1 %v427_v26  ;;  %v83_v43 = vld [vmem:[%s731_s1 + $0x1b8] sm:$0xff]  ;;  %v66_v45 = vld [vmem:[%s731_s1 + $0x130] sm:$0xff]  ;;  %v53_v48 = vld [vmem:[%s731_s1 + $0xc8] sm:$0xff]  ;;  %v403_v49 = vpack.c.bf16 %v35_v41, %v34_v38 }
   0xc   :  { %430 = vmatprep.subr.bf16.mxu1 %v429_v35  ;;  %v433_v44 = vpack.c.bf16 %v83_v43, %v82_v42  ;;  %v67_v46 = vld [vmem:[%s731_s1 + $0x138] sm:$0xff]  ;;  %v84_v50 = vld [vmem:[%s731_s1 + $0x1c0] sm:$0xff]  ;;  %v85_v51 = vld [vmem:[%s731_s1 + $0x1c8] sm:$0xff]  ;;  %v405_v53 = vpack.c.bf16 %v53_v48, %v52_v47 }
   0xd   :  { %400 = vmatpush3.bf16.msra.mxu0 %v399_v34  ;;  %v435_v52 = vpack.c.bf16 %v67_v46, %v66_v45  ;;  %v36_v54 = vld [vmem:[%s731_s1 + $0x40] sm:$0xff]  ;;  %v37_v55 = vld [vmem:[%s731_s1 + $0x48] sm:$0xff]  ;;  %v437_v57 = vpack.c.bf16 %v85_v51, %v84_v50  ;;  %v54_v59 = vld [vmem:[%s731_s1 + $0xd0] sm:$0xff] }
   0xe   :  { %402 = vmatprep.subr.bf16.mxu0 %v401_v40  ;;  %v68_v56 = vld [vmem:[%s731_s1 + $0x140] sm:$0xff]  ;;  %v69_v58 = vld [vmem:[%s731_s1 + $0x148] sm:$0xff]  ;;  %v55_v60 = vld [vmem:[%s731_s1 + $0xd8] sm:$0xff]  ;;  %v407_v63 = vpack.c.bf16 %v37_v55, %v36_v54 }
   0xf   :  { %432 = vmatpush3.bf16.msra.mxu1 %v431_v39  ;;  %v86_v61 = vld [vmem:[%s731_s1 + $0x1d0] sm:$0xff]  ;;  %v87_v62 = vld [vmem:[%s731_s1 + $0x1d8] sm:$0xff]  ;;  %v439_v0 = vpack.c.bf16 %v69_v58, %v68_v56  ;;  %v409_v1 = vpack.c.bf16 %v55_v60, %v54_v59  ;;  %v56_v7 = vld [vmem:[%s731_s1 + $0xe0] sm:$0xff] }
  0x10   :  { %434 = vmatprep.subr.bf16.mxu1 %v433_v44  ;;  %v38_v2 = vld [vmem:[%s731_s1 + $0x50] sm:$0xff]  ;;  %v39_v3 = vld [vmem:[%s731_s1 + $0x58] sm:$0xff]  ;;  %v441_v5 = vpack.c.bf16 %v87_v62, %v86_v61  ;;  %v57_v8 = vld [vmem:[%s731_s1 + $0xe8] sm:$0xff] }
  0x11   :  { %404 = vmatpush3.bf16.msra.mxu0 %v403_v49  ;;  %v70_v4 = vld [vmem:[%s731_s1 + $0x150] sm:$0xff]  ;;  %v71_v6 = vld [vmem:[%s731_s1 + $0x158] sm:$0xff]  ;;  %v88_v9 = vld [vmem:[%s731_s1 + $0x1e0] sm:$0xff]  ;;  %v411_v11 = vpack.c.bf16 %v39_v3, %v38_v2  ;;  %v413_v15 = vpack.c.bf16 %v57_v8, %v56_v7 }
  0x12   :  { %406 = vmatprep.subr.bf16.mxu0 %v405_v53  ;;  %v89_v10 = vld [vmem:[%s731_s1 + $0x1e8] sm:$0xff]  ;;  %v40_v12 = vld [vmem:[%s731_s1 + $0x60] sm:$0xff]  ;;  %v443_v14 = vpack.c.bf16 %v71_v6, %v70_v4  ;;  %v58_v20 = vld [vmem:[%s731_s1 + $0xf0] sm:$0xff] }
  0x13   :  { %436 = vmatpush3.bf16.msra.mxu1 %v435_v52  ;;  %v41_v13 = vld [vmem:[%s731_s1 + $0x68] sm:$0xff]  ;;  %v72_v16 = vld [vmem:[%s731_s1 + $0x160] sm:$0xff]  ;;  %v445_v19 = vpack.c.bf16 %v89_v10, %v88_v9  ;;  %v59_v21 = vld [vmem:[%s731_s1 + $0xf8] sm:$0xff] }
  0x14   :  { %438 = vmatprep.subr.bf16.mxu1 %v437_v57  ;;  %v73_v17 = vld [vmem:[%s731_s1 + $0x168] sm:$0xff]  ;;  %v23_v22 = vld [vmem:[%s732_s0 + $0x18] sm:$0xff]  ;;  %v90_v23 = vld [vmem:[%s731_s1 + $0x1f0] sm:$0xff]  ;;  %v415_v25 = vpack.c.bf16 %v41_v13, %v40_v12  ;;  %v417_v28 = vpack.c.bf16 %v59_v21, %v58_v20 }
  0x15   :  { %408 = vmatpush3.bf16.msra.mxu0 %v407_v63  ;;  %v21_v18 = vld [vmem:[%s732_s0 + $0x8] sm:$0xff]  ;;  %v91_v24 = vld [vmem:[%s731_s1 + $0x1f8] sm:$0xff]  ;;  %243 = vmatprep.mubr.f32.mxu1 %v23_v22  ;;  %v92_v26 = vld [vmem:[%s733_s2] sm:$0xff]  ;;  %v447_v27 = vpack.c.bf16 %v73_v17, %v72_v16 }
  0x16   :  { %410 = vmatprep.subr.bf16.mxu0 %v409_v1  ;;  %168 = vmatprep.mubr.f32.mxu0 %v21_v18  ;;  %v42_v29 = vld [vmem:[%s731_s1 + $0x70] sm:$0xff]  ;;  %v43_v30 = vld [vmem:[%s731_s1 + $0x78] sm:$0xff]  ;;  %v449_v31 = vpack.c.bf16 %v91_v24, %v90_v23  ;;  %v93_v34 = vld [vmem:[%s733_s2 + $0x8] sm:$0xff] }
  0x17   :  { %440 = vmatpush3.bf16.msra.mxu1 %v439_v0  ;;  %v74_v32 = vld [vmem:[%s731_s1 + $0x170] sm:$0xff]  ;;  %v75_v33 = vld [vmem:[%s731_s1 + $0x178] sm:$0xff]  ;;  %96 = vperm.xlu0 %454, %v92_v26   ;;  %v419_v35 = vpack.c.bf16 %v43_v30, %v42_v29  ;;  %v20_v37 = vld [vmem:[%s732_s0] sm:$0xff] }
  0x18   :  { %442 = vmatprep.subr.bf16.mxu1 %v441_v5  ;;  %v451_v36 = vpack.c.bf16 %v75_v33, %v74_v32  ;;  %v22_v38 = vld [vmem:[%s732_s0 + $0x10] sm:$0xff]  ;;  %v25_v39 = vld [vmem:[%s732_s0 + $0x28] sm:$0xff]  ;;  %v27_v40 = vld [vmem:[%s732_s0 + $0x38] sm:$0xff] }
  0x19   :  { %412 = vmatpush3.bf16.msra.mxu0 %v411_v11  ;;  %v24_v41 = vld [vmem:[%s732_s0 + $0x20] sm:$0xff]  ;;  %v26_v42 = vld [vmem:[%s732_s0 + $0x30] sm:$0xff]  ;;  %v278_v62 = vld [vmem:[%s734_s3 + $0x8] sm:$0xff] }
  0x1a   :  { %414 = vmatprep.subr.bf16.mxu0 %v413_v15  ;;  %v277_v61 = vld [vmem:[%s734_s3] sm:$0xff]  ;;  %v292_v8 = vld [vmem:[%s735_s4 + $0x8] sm:$0xff] }
  0x1b   :  { %444 = vmatpush3.bf16.msra.mxu1 %v443_v14  ;;  %101 = vperm.xlu0 %454, %v93_v34   ;;  %v291_v63 = vld [vmem:[%s735_s4] sm:$0xff] }
  0x1c   :  { %446 = vmatprep.subr.bf16.mxu1 %v445_v19 }
  0x1d   :  { %416 = vmatpush3.bf16.msra.mxu0 %v415_v25 }
  0x1e   :  { %418 = vmatprep.subr.bf16.mxu0 %v417_v28 }
  0x1f   :  { %448 = vmatpush3.bf16.msra.mxu1 %v447_v27 }
  0x20   :  { %450 = vmatprep.subr.bf16.mxu1 %v449_v31 }
  0x21   :  { %420 = vmatpush3.bf16.msra.mxu0 %v419_v35 }
  0x23   :  { %452 = vmatpush3.bf16.msra.mxu1 %v451_v36 }
  0x24   :  { %169 = vmatmul.mubr.f32.vlgmr.msra.gmra.mrb[0].mxu0 %v20_v37 }
  0x25   :  { %173 = vmatprep.mubr.f32.mxu0 %v25_v39 }
  0x26   :  { %244 = vmatmul.mubr.f32.vlgmr.msra.gmra.mrb[0].mxu1 %v22_v38 }
  0x27   :  { %248 = vmatprep.mubr.f32.mxu1 %v27_v40 }
  0x28   :  { %174 = vmatmul.mubr.f32.gmra.mrb[2].mxu0 %v24_v41 }
  0x2a   :  { %249 = vmatmul.mubr.f32.gmra.mrb[2].mxu1 %v26_v42 }
  0x96   :  { %v97_v43 = vpop.permute.xlu0 %96 }
  0x9a   :  { %v102_v57 = vpop.permute.xlu0 %101 }
  0xf7   :  { %v345_v44 = vpop.f32.mrb[0].mxu0 }
  0xf8   :  { %v346_v45 = vpop.f32.mrb[1].mxu0 }
  0xf9   :  { %v383_v46 = vpop.f32.mrb[0].mxu1  ;;  %v347_v47 = vadd.f32 %v346_v45, %v345_v44 }
  0xfa   :  { %v384_v48 = vpop.f32.mrb[1].mxu1 }
  0xfb   :  { %v385_v49 = vadd.f32 %v384_v48, %v383_v46  ;;  %v171_v50 = vadd.f32 %v347_v47, %v97_v43  ;;  %v348_v51 = vpop.f32.mrb[2].mxu0 }
  0xfc   :  { %v349_v52 = vpop.f32.mrb[3].mxu0 }
  0xfd   :  { %v386_v53 = vpop.f32.mrb[2].mxu1  ;;  %v350_v54 = vadd.f32 %v349_v52, %v348_v51  ;;  %v246_v56 = vadd.f32 %v385_v49, %v171_v50 }
  0xfe   :  { %v387_v55 = vpop.f32.mrb[3].mxu1 }
  0xff   :  { %v388_v58 = vadd.f32 %v387_v55, %v386_v53  ;;  %v176_v59 = vadd.f32 %v350_v54, %v102_v57  ;;  %254 = vadd.xlane.f32.xlu1 %v246_v56 }
 0x101   :  { %v251_v60 = vadd.f32 %v388_v58, %v176_v59 }
 0x103   :  { %256 = vadd.xlane.f32.xlu1 %v251_v60 }
 0x114   :  { %281 = vperm.xlu1 %455, %v277_v61  }
 0x118   :  { %286 = vperm.xlu1 %455, %v278_v62  }
 0x11c   :  { %295 = vperm.xlu1 %455, %v291_v63  }
 0x18c   :  { %v255_v0 = vpop.xlane.xlu1 %254 }
 0x18d   :  { %v259_v1 = vmul.f32 0.0078125, %v255_v0 }
 0x18f   :  { %v261_v2 = vsub.f32 %v246_v56, %v259_v1 }
 0x190   :  { %v257_v3 = vpop.xlane.xlu1 %256 }
 0x191   :  { %v260_v4 = vmul.f32 0.0078125, %v257_v3  ;;  %v263_v5 = vmul.f32 %v261_v2, %v261_v2 }
 0x193   :  { %v262_v6 = vsub.f32 %v251_v60, %v260_v4  ;;  %265 = vadd.xlane.f32.xlu0 %v263_v5 }
 0x194   :  { %v282_v9 = vpop.permute.xlu1 %281 }
 0x195   :  { %v264_v7 = vmul.f32 %v262_v6, %v262_v6 }
 0x197   :  { %267 = vadd.xlane.f32.xlu1 %v264_v7 }
 0x198   :  { %v287_v10 = vpop.permute.xlu1 %286 }
 0x19c   :  { %v296_v11 = vpop.permute.xlu1 %295 }
 0x1a8   :  { %300 = vperm.xlu1 %455, %v292_v8  }
 0x220   :  { %v266_v12 = vpop.xlane.xlu0 %265 }
 0x221   :  { %v269_v13 = vmul.f32 0.0078125, %v266_v12 }
 0x223   :  { %v271_v14 = vadd.f32 1e-05, %v269_v13 }
 0x224   :  { %v268_v15 = vpop.xlane.xlu1 %267 }
 0x225   :  { %456 = vrsqrt.f32 %v271_v14  ;;  %v270_v16 = vmul.f32 0.0078125, %v268_v15 }
 0x227   :  { %v272_v17 = vadd.f32 1e-05, %v270_v16 }
 0x228   :  { %v301_v26 = vpop.permute.xlu1 %300 }
 0x229   :  { %458 = vrsqrt.f32 %v272_v17 }
 0x22f   :  { %v457_v18 = vpop.eup %456 }
 0x230   :  { %v275_v19 = vmul.f32 %v457_v18, %v261_v2 }
 0x232   :  { %v289_v20 = vmul.f32 %v282_v9, %v275_v19 }
 0x233   :  { %v459_v21 = vpop.eup %458 }
 0x234   :  { %v276_v22 = vmul.f32 %v459_v21, %v262_v6  ;;  %v303_v23 = vadd.f32 %v296_v11, %v289_v20 }
 0x236   :  { %v290_v24 = vmul.f32 %v287_v10, %v276_v22  ;;  %v305_v25 = vmax.f32 %v303_v23, 0.0 }
 0x238   :  { %307 = vst [vmem:[%s736_s5] sm:$0xff] %v305_v25  ;;  %v304_v27 = vadd.f32 %v301_v26, %v290_v24 }
 0x23a   :  { %v306_v28 = vmax.f32 %v304_v27, 0.0 }
 0x23c   :  { %308 = vst [vmem:[%s736_s5 + $0x8] sm:$0xff] %v306_v28 }

// kernel: generator_forward.6
= control target key start
LH: loop header
LB: loop body
LE: loop exit
PB: predicated region body
PF: predicated region fallthrough
CT: control target
= control target key end

     0   :  { %v490_v3 = vmov 0   ;;  %s932_s1 = inlined_call_operand.vmem [shape: f32[256,512], index: 1, kind: input, shape index: {}]   ;;  %s933_s0 = inlined_call_operand.vmem [shape: f32[8,256], index: 0, kind: input, shape index: {}]   ;;  %s934_s2 = inlined_call_operand.vmem [shape: f32[8,1], index: 2, kind: input, shape index: {}]   ;;  %s935_s3 = inlined_call_operand.vmem [shape: f32[8,1], index: 3, kind: input, shape index: {}]   ;;  %s936_s4 = inlined_call_operand.vmem [shape: f32[8,1], index: 4, kind: input, shape index: {}]   ;;  %s937_s5 = inlined_call_operand.vmem [shape: f32[8,512], index: 5, kind: output, shape index: {}]  }
   0x1   :  { %v23_v0 = vld [vmem:[%s932_s1 + $0x8] sm:$0xff]  ;;  %v25_v2 = vld [vmem:[%s932_s1 + $0x18] sm:$0xff]  ;;  %486 = vset.pattern.permute.xlu0 %v490_v3  ;;  %487 = vset.pattern.permute.xlu1 %v490_v3  ;;  %v22_v6 = vld [vmem:[%s932_s1] sm:$0xff] }
   0x2   :  { %v27_v1 = vld [vmem:[%s932_s1 + $0x28] sm:$0xff]  ;;  %v29_v5 = vld [vmem:[%s932_s1 + $0x38] sm:$0xff]  ;;  %v26_v7 = vld [vmem:[%s932_s1 + $0x20] sm:$0xff] }
   0x3   :  { %v357_v4 = vpack.c.bf16 %v27_v1, %v23_v0  ;;  %v421_v8 = vpack.c.bf16 %v29_v5, %v25_v2  ;;  %v359_v9 = vpack.c.bf16 %v26_v7, %v22_v6  ;;  %v24_v10 = vld [vmem:[%s932_s1 + $0x10] sm:$0xff]  ;;  %v31_v12 = vld [vmem:[%s932_s1 + $0x48] sm:$0xff]  ;;  %v33_v15 = vld [vmem:[%s932_s1 + $0x58] sm:$0xff] }
   0x4   :  { %v28_v11 = vld [vmem:[%s932_s1 + $0x30] sm:$0xff]  ;;  %v35_v14 = vld [vmem:[%s932_s1 + $0x68] sm:$0xff]  ;;  %v37_v16 = vld [vmem:[%s932_s1 + $0x78] sm:$0xff] }
   0x5   :  { %358 = vmatprep.subr.bf16.mxu0 %v357_v4  ;;  %v423_v13 = vpack.c.bf16 %v28_v11, %v24_v10  ;;  %422 = vmatprep.subr.bf16.mxu1 %v421_v8  ;;  %v361_v17 = vpack.c.bf16 %v35_v14, %v31_v12  ;;  %v425_v18 = vpack.c.bf16 %v37_v16, %v33_v15  ;;  %v30_v19 = vld [vmem:[%s932_s1 + $0x40] sm:$0xff]  ;;  %v32_v21 = vld [vmem:[%s932_s1 + $0x50] sm:$0xff]  ;;  %v39_v24 = vld [vmem:[%s932_s1 + $0x88] sm:$0xff] }
   0x6   :  { %360 = vmatpush1.bf16.msra.mxu0 %v359_v9  ;;  %v34_v20 = vld [vmem:[%s932_s1 + $0x60] sm:$0xff]  ;;  %v36_v23 = vld [vmem:[%s932_s1 + $0x70] sm:$0xff]  ;;  %v43_v25 = vld [vmem:[%s932_s1 + $0xa8] sm:$0xff] }
   0x7   :  { %424 = vmatpush1.bf16.msra.mxu1 %v423_v13  ;;  %v363_v22 = vpack.c.bf16 %v34_v20, %v30_v19  ;;  %362 = vmatprep.subr.bf16.mxu0 %v361_v17  ;;  %v427_v26 = vpack.c.bf16 %v36_v23, %v32_v21  ;;  %v365_v27 = vpack.c.bf16 %v43_v25, %v39_v24  ;;  %v41_v28 = vld [vmem:[%s932_s1 + $0x98] sm:$0xff]  ;;  %v38_v30 = vld [vmem:[%s932_s1 + $0x80] sm:$0xff]  ;;  %v40_v33 = vld [vmem:[%s932_s1 + $0x90] sm:$0xff] }
   0x8   :  { %426 = vmatprep.subr.bf16.mxu1 %v425_v18  ;;  %v45_v29 = vld [vmem:[%s932_s1 + $0xb8] sm:$0xff]  ;;  %v42_v32 = vld [vmem:[%s932_s1 + $0xa0] sm:$0xff]  ;;  %v44_v34 = vld [vmem:[%s932_s1 + $0xb0] sm:$0xff] }
   0x9   :  { %v429_v31 = vpack.c.bf16 %v45_v29, %v41_v28  ;;  %v367_v35 = vpack.c.bf16 %v42_v32, %v38_v30  ;;  %v47_v36 = vld [vmem:[%s932_s1 + $0xc8] sm:$0xff]  ;;  %v49_v38 = vld [vmem:[%s932_s1 + $0xd8] sm:$0xff]  ;;  %v431_v39 = vpack.c.bf16 %v44_v34, %v40_v33  ;;  %v46_v42 = vld [vmem:[%s932_s1 + $0xc0] sm:$0xff] }
   0xa   :  { %364 = vmatpush1.bf16.msra.mxu0 %v363_v22  ;;  %v51_v37 = vld [vmem:[%s932_s1 + $0xe8] sm:$0xff]  ;;  %v53_v41 = vld [vmem:[%s932_s1 + $0xf8] sm:$0xff]  ;;  %v50_v43 = vld [vmem:[%s932_s1 + $0xe0] sm:$0xff] }
   0xb   :  { %428 = vmatpush1.bf16.msra.mxu1 %v427_v26  ;;  %366 = vmatprep.subr.bf16.mxu0 %v365_v27  ;;  %v369_v40 = vpack.c.bf16 %v51_v37, %v47_v36  ;;  %v433_v44 = vpack.c.bf16 %v53_v41, %v49_v38  ;;  %v48_v45 = vld [vmem:[%s932_s1 + $0xd0] sm:$0xff]  ;;  %v55_v47 = vld [vmem:[%s932_s1 + $0x108] sm:$0xff]  ;;  %v57_v49 = vld [vmem:[%s932_s1 + $0x118] sm:$0xff]  ;;  %v371_v51 = vpack.c.bf16 %v50_v43, %v46_v42 }
   0xc   :  { %430 = vmatprep.subr.bf16.mxu1 %v429_v31  ;;  %v52_v46 = vld [vmem:[%s932_s1 + $0xf0] sm:$0xff]  ;;  %v59_v48 = vld [vmem:[%s932_s1 + $0x128] sm:$0xff]  ;;  %v61_v50 = vld [vmem:[%s932_s1 + $0x138] sm:$0xff] }
   0xd   :  { %v435_v52 = vpack.c.bf16 %v52_v46, %v48_v45  ;;  %v373_v53 = vpack.c.bf16 %v59_v48, %v55_v47  ;;  %v54_v54 = vld [vmem:[%s932_s1 + $0x100] sm:$0xff]  ;;  %v56_v56 = vld [vmem:[%s932_s1 + $0x110] sm:$0xff]  ;;  %v437_v57 = vpack.c.bf16 %v61_v50, %v57_v49  ;;  %v63_v59 = vld [vmem:[%s932_s1 + $0x148] sm:$0xff] }
   0xe   :  { %368 = vmatpush1.bf16.msra.mxu0 %v367_v35  ;;  %v58_v55 = vld [vmem:[%s932_s1 + $0x120] sm:$0xff]  ;;  %v60_v58 = vld [vmem:[%s932_s1 + $0x130] sm:$0xff]  ;;  %v67_v60 = vld [vmem:[%s932_s1 + $0x168] sm:$0xff] }
   0xf   :  { %432 = vmatpush1.bf16.msra.mxu1 %v431_v39  ;;  %370 = vmatprep.subr.bf16.mxu0 %v369_v40  ;;  %v65_v61 = vld [vmem:[%s932_s1 + $0x158] sm:$0xff]  ;;  %v375_v63 = vpack.c.bf16 %v58_v55, %v54_v54  ;;  %v439_v0 = vpack.c.bf16 %v60_v58, %v56_v56  ;;  %v377_v1 = vpack.c.bf16 %v67_v60, %v63_v59  ;;  %v62_v2 = vld [vmem:[%s932_s1 + $0x140] sm:$0xff]  ;;  %v64_v4 = vld [vmem:[%s932_s1 + $0x150] sm:$0xff] }
  0x10   :  { %434 = vmatprep.subr.bf16.mxu1 %v433_v44  ;;  %v69_v62 = vld [vmem:[%s932_s1 + $0x178] sm:$0xff]  ;;  %v66_v3 = vld [vmem:[%s932_s1 + $0x160] sm:$0xff]  ;;  %v68_v6 = vld [vmem:[%s932_s1 + $0x170] sm:$0xff] }
  0x11   :  { %v441_v5 = vpack.c.bf16 %v69_v62, %v65_v61  ;;  %v71_v7 = vld [vmem:[%s932_s1 + $0x188] sm:$0xff]  ;;  %v73_v9 = vld [vmem:[%s932_s1 + $0x198] sm:$0xff]  ;;  %v379_v11 = vpack.c.bf16 %v66_v3, %v62_v2  ;;  %v443_v12 = vpack.c.bf16 %v68_v6, %v64_v4  ;;  %v70_v14 = vld [vmem:[%s932_s1 + $0x180] sm:$0xff] }
  0x12   :  { %372 = vmatpush1.bf16.msra.mxu0 %v371_v51  ;;  %v75_v8 = vld [vmem:[%s932_s1 + $0x1a8] sm:$0xff]  ;;  %v77_v10 = vld [vmem:[%s932_s1 + $0x1b8] sm:$0xff]  ;;  %v74_v15 = vld [vmem:[%s932_s1 + $0x1a0] sm:$0xff] }
  0x13   :  { %436 = vmatpush1.bf16.msra.mxu1 %v435_v52  ;;  %374 = vmatprep.subr.bf16.mxu0 %v373_v53  ;;  %v381_v13 = vpack.c.bf16 %v75_v8, %v71_v7  ;;  %v72_v16 = vld [vmem:[%s932_s1 + $0x190] sm:$0xff]  ;;  %v445_v17 = vpack.c.bf16 %v77_v10, %v73_v9  ;;  %v79_v19 = vld [vmem:[%s932_s1 + $0x1c8] sm:$0xff]  ;;  %v81_v21 = vld [vmem:[%s932_s1 + $0x1d8] sm:$0xff]  ;;  %v383_v23 = vpack.c.bf16 %v74_v15, %v70_v14 }
  0x14   :  { %438 = vmatprep.subr.bf16.mxu1 %v437_v57  ;;  %v76_v18 = vld [vmem:[%s932_s1 + $0x1b0] sm:$0xff]  ;;  %v83_v20 = vld [vmem:[%s932_s1 + $0x1e8] sm:$0xff]  ;;  %v85_v22 = vld [vmem:[%s932_s1 + $0x1f8] sm:$0xff] }
  0x15   :  { %v447_v24 = vpack.c.bf16 %v76_v18, %v72_v16  ;;  %v385_v25 = vpack.c.bf16 %v83_v20, %v79_v19  ;;  %v78_v26 = vld [vmem:[%s932_s1 + $0x1c0] sm:$0xff]  ;;  %v80_v28 = vld [vmem:[%s932_s1 + $0x1d0] sm:$0xff]  ;;  %v449_v29 = vpack.c.bf16 %v85_v22, %v81_v21  ;;  %v87_v31 = vld [vmem:[%s932_s1 + $0x208] sm:$0xff] }
  0x16   :  { %376 = vmatpush1.bf16.msra.mxu0 %v375_v63  ;;  %v82_v27 = vld [vmem:[%s932_s1 + $0x1e0] sm:$0xff]  ;;  %v84_v30 = vld [vmem:[%s932_s1 + $0x1f0] sm:$0xff]  ;;  %v91_v32 = vld [vmem:[%s932_s1 + $0x228] sm:$0xff] }
  0x17   :  { %440 = vmatpush1.bf16.msra.mxu1 %v439_v0  ;;  %378 = vmatprep.subr.bf16.mxu0 %v377_v1  ;;  %v89_v33 = vld [vmem:[%s932_s1 + $0x218] sm:$0xff]  ;;  %v387_v35 = vpack.c.bf16 %v82_v27, %v78_v26  ;;  %v451_v36 = vpack.c.bf16 %v84_v30, %v80_v28  ;;  %v389_v37 = vpack.c.bf16 %v91_v32, %v87_v31  ;;  %v86_v38 = vld [vmem:[%s932_s1 + $0x200] sm:$0xff]  ;;  %v88_v40 = vld [vmem:[%s932_s1 + $0x210] sm:$0xff] }
  0x18   :  { %442 = vmatprep.subr.bf16.mxu1 %v441_v5  ;;  %v93_v34 = vld [vmem:[%s932_s1 + $0x238] sm:$0xff]  ;;  %v90_v39 = vld [vmem:[%s932_s1 + $0x220] sm:$0xff]  ;;  %v92_v42 = vld [vmem:[%s932_s1 + $0x230] sm:$0xff] }
  0x19   :  { %v453_v41 = vpack.c.bf16 %v93_v34, %v89_v33  ;;  %v95_v43 = vld [vmem:[%s932_s1 + $0x248] sm:$0xff]  ;;  %v97_v45 = vld [vmem:[%s932_s1 + $0x258] sm:$0xff]  ;;  %v391_v47 = vpack.c.bf16 %v90_v39, %v86_v38  ;;  %v455_v48 = vpack.c.bf16 %v92_v42, %v88_v40  ;;  %v94_v50 = vld [vmem:[%s932_s1 + $0x240] sm:$0xff] }
  0x1a   :  { %380 = vmatpush1.bf16.msra.mxu0 %v379_v11  ;;  %v99_v44 = vld [vmem:[%s932_s1 + $0x268] sm:$0xff]  ;;  %v101_v46 = vld [vmem:[%s932_s1 + $0x278] sm:$0xff]  ;;  %v98_v51 = vld [vmem:[%s932_s1 + $0x260] sm:$0xff] }
  0x1b   :  { %444 = vmatpush1.bf16.msra.mxu1 %v443_v12  ;;  %382 = vmatprep.subr.bf16.mxu0 %v381_v13  ;;  %v393_v49 = vpack.c.bf16 %v99_v44, %v95_v43  ;;  %v96_v52 = vld [vmem:[%s932_s1 + $0x250] sm:$0xff]  ;;  %v457_v53 = vpack.c.bf16 %v101_v46, %v97_v45  ;;  %v103_v55 = vld [vmem:[%s932_s1 + $0x288] sm:$0xff]  ;;  %v105_v57 = vld [vmem:[%s932_s1 + $0x298] sm:$0xff]  ;;  %v395_v59 = vpack.c.bf16 %v98_v51, %v94_v50 }
  0x1c   :  { %446 = vmatprep.subr.bf16.mxu1 %v445_v17  ;;  %v100_v54 = vld [vmem:[%s932_s1 + $0x270] sm:$0xff]  ;;  %v107_v56 = vld [vmem:[%s932_s1 + $0x2a8] sm:$0xff]  ;;  %v109_v58 = vld [vmem:[%s932_s1 + $0x2b8] sm:$0xff] }
  0x1d   :  { %v459_v60 = vpack.c.bf16 %v100_v54, %v96_v52  ;;  %v397_v61 = vpack.c.bf16 %v107_v56, %v103_v55  ;;  %v102_v62 = vld [vmem:[%s932_s1 + $0x280] sm:$0xff]  ;;  %v104_v0 = vld [vmem:[%s932_s1 + $0x290] sm:$0xff]  ;;  %v461_v1 = vpack.c.bf16 %v109_v58, %v105_v57  ;;  %v111_v3 = vld [vmem:[%s932_s1 + $0x2c8] sm:$0xff] }
  0x1e   :  { %384 = vmatpush1.bf16.msra.mxu0 %v383_v23  ;;  %v106_v63 = vld [vmem:[%s932_s1 + $0x2a0] sm:$0xff]  ;;  %v108_v2 = vld [vmem:[%s932_s1 + $0x2b0] sm:$0xff]  ;;  %v115_v4 = vld [vmem:[%s932_s1 + $0x2e8] sm:$0xff] }
  0x1f   :  { %448 = vmatpush1.bf16.msra.mxu1 %v447_v24  ;;  %386 = vmatprep.subr.bf16.mxu0 %v385_v25  ;;  %v113_v5 = vld [vmem:[%s932_s1 + $0x2d8] sm:$0xff]  ;;  %v399_v7 = vpack.c.bf16 %v106_v63, %v102_v62  ;;  %v110_v8 = vld [vmem:[%s932_s1 + $0x2c0] sm:$0xff]  ;;  %v463_v9 = vpack.c.bf16 %v108_v2, %v104_v0  ;;  %v401_v10 = vpack.c.bf16 %v115_v4, %v111_v3  ;;  %v112_v12 = vld [vmem:[%s932_s1 + $0x2d0] sm:$0xff] }
  0x20   :  { %450 = vmatprep.subr.bf16.mxu1 %v449_v29  ;;  %v117_v6 = vld [vmem:[%s932_s1 + $0x2f8] sm:$0xff]  ;;  %v114_v11 = vld [vmem:[%s932_s1 + $0x2e0] sm:$0xff]  ;;  %v116_v13 = vld [vmem:[%s932_s1 + $0x2f0] sm:$0xff] }
  0x21   :  { %v465_v14 = vpack.c.bf16 %v117_v6, %v113_v5  ;;  %v119_v15 = vld [vmem:[%s932_s1 + $0x308] sm:$0xff]  ;;  %v121_v18 = vld [vmem:[%s932_s1 + $0x318] sm:$0xff]  ;;  %v150_v20 = vld [vmem:[%s934_s2] sm:$0xff]  ;;  %v403_v21 = vpack.c.bf16 %v114_v11, %v110_v8  ;;  %v467_v22 = vpack.c.bf16 %v116_v13, %v112_v12 }
  0x22   :  { %388 = vmatpush1.bf16.msra.mxu0 %v387_v35  ;;  %v123_v16 = vld [vmem:[%s932_s1 + $0x328] sm:$0xff]  ;;  %v125_v19 = vld [vmem:[%s932_s1 + $0x338] sm:$0xff]  ;;  %153 = vperm.xlu0 %486, %v150_v20   ;;  %v118_v24 = vld [vmem:[%s932_s1 + $0x300] sm:$0xff] }
  0x23   :  { %452 = vmatpush1.bf16.msra.mxu1 %v451_v36  ;;  %390 = vmatprep.subr.bf16.mxu0 %v389_v37  ;;  %v21_v17 = vld [vmem:[%s933_s0 + $0x8] sm:$0xff]  ;;  %v405_v23 = vpack.c.bf16 %v123_v16, %v119_v15  ;;  %v122_v25 = vld [vmem:[%s932_s1 + $0x320] sm:$0xff]  ;;  %v120_v26 = vld [vmem:[%s932_s1 + $0x310] sm:$0xff]  ;;  %v469_v27 = vpack.c.bf16 %v125_v19, %v121_v18 }
  0x24   :  { %454 = vmatprep.subr.bf16.mxu1 %v453_v41  ;;  %220 = vmatprep.mubr.f32.mxu0 %v21_v17  ;;  %v124_v28 = vld [vmem:[%s932_s1 + $0x330] sm:$0xff]  ;;  %v127_v29 = vld [vmem:[%s932_s1 + $0x348] sm:$0xff]  ;;  %v129_v31 = vld [vmem:[%s932_s1 + $0x358] sm:$0xff]  ;;  %v407_v33 = vpack.c.bf16 %v122_v25, %v118_v24 }
  0x25   :  { %291 = vmatprep.mubr.f32.mxu1 %v21_v17  ;;  %v131_v30 = vld [vmem:[%s932_s1 + $0x368] sm:$0xff]  ;;  %v133_v32 = vld [vmem:[%s932_s1 + $0x378] sm:$0xff]  ;;  %v471_v34 = vpack.c.bf16 %v124_v28, %v120_v26  ;;  %v126_v36 = vld [vmem:[%s932_s1 + $0x340] sm:$0xff] }
  0x26   :  { %392 = vmatpush1.bf16.msra.mxu0 %v391_v47  ;;  %v409_v35 = vpack.c.bf16 %v131_v30, %v127_v29  ;;  %v130_v37 = vld [vmem:[%s932_s1 + $0x360] sm:$0xff]  ;;  %v128_v38 = vld [vmem:[%s932_s1 + $0x350] sm:$0xff]  ;;  %v473_v39 = vpack.c.bf16 %v133_v32, %v129_v31  ;;  %v135_v41 = vld [vmem:[%s932_s1 + $0x388] sm:$0xff] }
  0x27   :  { %456 = vmatpush1.bf16.msra.mxu1 %v455_v48  ;;  %394 = vmatprep.subr.bf16.mxu0 %v393_v49  ;;  %v132_v40 = vld [vmem:[%s932_s1 + $0x370] sm:$0xff]  ;;  %v139_v42 = vld [vmem:[%s932_s1 + $0x3a8] sm:$0xff]  ;;  %v137_v43 = vld [vmem:[%s932_s1 + $0x398] sm:$0xff]  ;;  %v411_v45 = vpack.c.bf16 %v130_v37, %v126_v36 }
  0x28   :  { %458 = vmatprep.subr.bf16.mxu1 %v457_v53  ;;  %v141_v44 = vld [vmem:[%s932_s1 + $0x3b8] sm:$0xff]  ;;  %v475_v46 = vpack.c.bf16 %v132_v40, %v128_v38  ;;  %v413_v47 = vpack.c.bf16 %v139_v42, %v135_v41  ;;  %v134_v48 = vld [vmem:[%s932_s1 + $0x380] sm:$0xff]  ;;  %v136_v50 = vld [vmem:[%s932_s1 + $0x390] sm:$0xff] }
  0x29   :  { %v138_v49 = vld [vmem:[%s932_s1 + $0x3a0] sm:$0xff]  ;;  %v477_v51 = vpack.c.bf16 %v141_v44, %v137_v43  ;;  %v140_v52 = vld [vmem:[%s932_s1 + $0x3b0] sm:$0xff]  ;;  %v143_v53 = vld [vmem:[%s932_s1 + $0x3c8] sm:$0xff] }
  0x2a   :  { %396 = vmatpush1.bf16.msra.mxu0 %v395_v59  ;;  %v147_v54 = vld [vmem:[%s932_s1 + $0x3e8] sm:$0xff]  ;;  %v145_v55 = vld [vmem:[%s932_s1 + $0x3d8] sm:$0xff]  ;;  %v415_v57 = vpack.c.bf16 %v138_v49, %v134_v48  ;;  %v479_v58 = vpack.c.bf16 %v140_v52, %v136_v50  ;;  %v144_v63 = vld [vmem:[%s932_s1 + $0x3d0] sm:$0xff] }
  0x2b   :  { %460 = vmatpush1.bf16.msra.mxu1 %v459_v60  ;;  %398 = vmatprep.subr.bf16.mxu0 %v397_v61  ;;  %v149_v56 = vld [vmem:[%s932_s1 + $0x3f8] sm:$0xff]  ;;  %v417_v59 = vpack.c.bf16 %v147_v54, %v143_v53  ;;  %v142_v60 = vld [vmem:[%s932_s1 + $0x3c0] sm:$0xff]  ;;  %v148_v0 = vld [vmem:[%s932_s1 + $0x3f0] sm:$0xff] }
  0x2c   :  { %462 = vmatprep.subr.bf16.mxu1 %v461_v1  ;;  %v146_v61 = vld [vmem:[%s932_s1 + $0x3e0] sm:$0xff]  ;;  %v481_v62 = vpack.c.bf16 %v149_v56, %v145_v55  ;;  %v483_v2 = vpack.c.bf16 %v148_v0, %v144_v63 }
  0x2d   :  { %v419_v1 = vpack.c.bf16 %v146_v61, %v142_v60  ;;  %v20_v3 = vld [vmem:[%s933_s0] sm:$0xff] }
  0x2e   :  { %400 = vmatpush1.bf16.msra.mxu0 %v399_v7  ;;  %v325_v4 = vld [vmem:[%s935_s3] sm:$0xff] }
  0x2f   :  { %464 = vmatpush1.bf16.msra.mxu1 %v463_v9  ;;  %402 = vmatprep.subr.bf16.mxu0 %v401_v10  ;;  %v335_v30 = vld [vmem:[%s936_s4] sm:$0xff] }
  0x30   :  { %466 = vmatprep.subr.bf16.mxu1 %v465_v14  ;;  %328 = vperm.xlu1 %487, %v325_v4  }
  0x32   :  { %404 = vmatpush1.bf16.msra.mxu0 %v403_v21 }
  0x33   :  { %468 = vmatpush1.bf16.msra.mxu1 %v467_v22  ;;  %406 = vmatprep.subr.bf16.mxu0 %v405_v23 }
  0x34   :  { %470 = vmatprep.subr.bf16.mxu1 %v469_v27 }
  0x36   :  { %408 = vmatpush1.bf16.msra.mxu0 %v407_v33 }
  0x37   :  { %472 = vmatpush1.bf16.msra.mxu1 %v471_v34  ;;  %410 = vmatprep.subr.bf16.mxu0 %v409_v35 }
  0x38   :  { %474 = vmatprep.subr.bf16.mxu1 %v473_v39 }
  0x3a   :  { %412 = vmatpush1.bf16.msra.mxu0 %v411_v45 }
  0x3b   :  { %476 = vmatpush1.bf16.msra.mxu1 %v475_v46  ;;  %414 = vmatprep.subr.bf16.mxu0 %v413_v47 }
  0x3c   :  { %478 = vmatprep.subr.bf16.mxu1 %v477_v51 }
  0x3e   :  { %416 = vmatpush1.bf16.msra.mxu0 %v415_v57 }
  0x3f   :  { %480 = vmatpush1.bf16.msra.mxu1 %v479_v58  ;;  %418 = vmatprep.subr.bf16.mxu0 %v417_v59 }
  0x40   :  { %482 = vmatprep.subr.bf16.mxu1 %v481_v62 }
  0x42   :  { %420 = vmatpush1.bf16.msra.mxu0 %v419_v1 }
  0x43   :  { %484 = vmatpush1.bf16.msra.mxu1 %v483_v2 }
  0x45   :  { %221 = vmatmul.mubr.f32.vlgmr.msra.gmra.mrb[0].mxu0 %v20_v3 }
  0x46   :  { %292 = vmatmul.mubr.f32.vlgmr.msra.gmra.mrb[0].mxu1 %v20_v3 }
  0xa1   :  { %v154_v5 = vpop.permute.xlu0 %153 }
  0xaf   :  { %v329_v31 = vpop.permute.xlu1 %328 }
 0x118   :  { %v222_v6 = vpop.f32.mrb[0].mxu0 }
 0x119   :  { %v223_v7 = vadd.f32 %v222_v6, %v154_v5  ;;  %v293_v8 = vpop.f32.mrb[0].mxu1  ;;  %v224_v9 = vpop.f32.mrb[1].mxu0 }
 0x11a   :  { %v225_v10 = vadd.f32 %v224_v9, %v154_v5  ;;  %v295_v11 = vpop.f32.mrb[1].mxu1  ;;  %v294_v12 = vadd.f32 %v293_v8, %v154_v5 }
 0x11b   :  { %v296_v14 = vadd.f32 %v295_v11, %v154_v5 }
 0x11c   :  { %v298_v13 = vadd.f32 %v225_v10, %v223_v7 }
 0x11e   :  { %v299_v15 = vadd.f32 %v298_v13, %v294_v12 }
 0x120   :  { %v300_v16 = vadd.f32 %v299_v15, %v296_v14 }
 0x122   :  { %301 = vadd.xlane.f32.xlu0 %v300_v16 }
 0x1af   :  { %v302_v17 = vpop.xlane.xlu0 %301 }
 0x1b0   :  { %v304_v18 = vmul.f32 0.001953125, %v302_v17 }
 0x1b2   :  { %v305_v19 = vsub.f32 %v223_v7, %v304_v18  ;;  %v306_v20 = vsub.f32 %v225_v10, %v304_v18  ;;  %v307_v21 = vsub.f32 %v294_v12, %v304_v18  ;;  %v308_v22 = vsub.f32 %v296_v14, %v304_v18 }
 0x1b4   :  { %v309_v23 = vmul.f32 %v305_v19, %v305_v19  ;;  %v310_v24 = vmul.f32 %v306_v20, %v306_v20  ;;  %v311_v25 = vmul.f32 %v307_v21, %v307_v21  ;;  %v312_v27 = vmul.f32 %v308_v22, %v308_v22 }
 0x1b6   :  { %v313_v26 = vadd.f32 %v310_v24, %v309_v23 }
 0x1b8   :  { %v314_v28 = vadd.f32 %v313_v26, %v311_v25 }
 0x1ba   :  { %v315_v29 = vadd.f32 %v314_v28, %v312_v27 }
 0x1bc   :  { %316 = vadd.xlane.f32.xlu1 %v315_v29 }
 0x1cd   :  { %338 = vperm.xlu1 %487, %v335_v30  }
 0x249   :  { %v317_v32 = vpop.xlane.xlu1 %316 }
 0x24a   :  { %v318_v33 = vmul.f32 0.001953125, %v317_v32 }
 0x24c   :  { %v319_v34 = vadd.f32 1e-05, %v318_v33 }
 0x24d   :  { %v339_v44 = vpop.permute.xlu1 %338 }
 0x24e   :  { %488 = vrsqrt.f32 %v319_v34 }
 0x258   :  { %v489_v35 = vpop.eup %488 }
 0x259   :  { %v321_v36 = vmul.f32 %v489_v35, %v305_v19  ;;  %v322_v37 = vmul.f32 %v489_v35, %v306_v20  ;;  %v323_v38 = vmul.f32 %v489_v35, %v307_v21  ;;  %v324_v39 = vmul.f32 %v489_v35, %v308_v22 }
 0x25b   :  { %v331_v40 = vmul.f32 %v329_v31, %v321_v36  ;;  %v332_v41 = vmul.f32 %v329_v31, %v322_v37  ;;  %v333_v42 = vmul.f32 %v329_v31, %v323_v38  ;;  %v334_v43 = vmul.f32 %v329_v31, %v324_v39 }
 0x25d   :  { %v341_v45 = vadd.f32 %v339_v44, %v331_v40  ;;  %v342_v46 = vadd.f32 %v339_v44, %v332_v41  ;;  %v343_v47 = vadd.f32 %v339_v44, %v333_v42  ;;  %v344_v48 = vadd.f32 %v339_v44, %v334_v43 }
 0x25f   :  { %v345_v49 = vmax.f32 %v341_v45, 0.0  ;;  %v346_v50 = vmax.f32 %v342_v46, 0.0  ;;  %v347_v51 = vmax.f32 %v343_v47, 0.0  ;;  %v348_v52 = vmax.f32 %v344_v48, 0.0 }
 0x261   :  { %349 = vst [vmem:[%s937_s5] sm:$0xff] %v345_v49  ;;  %350 = vst [vmem:[%s937_s5 + $0x8] sm:$0xff] %v346_v50 }
 0x262   :  { %351 = vst [vmem:[%s937_s5 + $0x10] sm:$0xff] %v347_v51  ;;  %352 = vst [vmem:[%s937_s5 + $0x18] sm:$0xff] %v348_v52 }

// kernel: generator_forward.7
= control target key start
LH: loop header
LB: loop body
LE: loop exit
PB: predicated region body
PF: predicated region fallthrough
CT: control target
= control target key end

     0   :  { %v1157_v3 = vmov 0.0   ;;  %v1158_v9 = vmov 0   ;;  %vm1160_vm0 = vmmov 0   ;;  %s1851_s1 = inlined_call_operand.vmem [shape: f32[128,1568], index: 1, kind: input, shape index: {}]   ;;  %s1852_s2 = inlined_call_operand.<no memory space> [shape: f32[1,1], index: 2, kind: input, shape index: {}]   ;;  %s1853_s0 = inlined_call_operand.vmem [shape: f32[1,128], index: 0, kind: input, shape index: {}]   ;;  %s1854_s3 = inlined_call_operand.vmem [shape: f32[1,1568], index: 3, kind: output, shape index: {}]  }
   0x1   :  { %v18_v0 = vld [vmem:[%s1851_s1 + $0x8] sm:$0xff]  ;;  %v31_v1 = vld [vmem:[%s1851_s1 + $0x70] sm:$0xff]  ;;  %v20_v2 = vld [vmem:[%s1851_s1 + $0x18] sm:$0xff]  ;;  %299 = vmatprep.mubr.f32.mxu0 %v1157_v3  ;;  %370 = vmatprep.mubr.f32.mxu1 %v1157_v3  ;;  %v8_v4 = vstv %s1852_s2 }
   0x2   :  { %v909_v5 = vpack.c.bf16 %v31_v1, %v18_v0  ;;  %v33_v6 = vld [vmem:[%s1851_s1 + $0x80] sm:$0xff]  ;;  %v30_v8 = vld [vmem:[%s1851_s1 + $0x68] sm:$0xff]  ;;  %1130 = vset.pattern.permute.xlu0 %v1158_v9  ;;  %9 = vst [vmem:[#allocation2] sm:$0x1] %v8_v4  ;;  %v19_v12 = vld [vmem:[%s1851_s1 + $0x10] sm:$0xff] }
   0x3   :  { %v17_v7 = vld [vmem:[%s1851_s1] sm:$0xff]  ;;  %v941_v10 = vpack.c.bf16 %v33_v6, %v20_v2  ;;  %v32_v13 = vld [vmem:[%s1851_s1 + $0x78] sm:$0xff]  ;;  %v46_v17 = vld [vmem:[%s1851_s1 + $0xe8] sm:$0xff] }
   0x4   :  { %v911_v11 = vpack.c.bf16 %v30_v8, %v17_v7  ;;  %v44_v14 = vld [vmem:[%s1851_s1 + $0xd8] sm:$0xff]  ;;  %910 = vmatprep.subr.bf16.mxu0 %v909_v5  ;;  %v943_v15 = vpack.c.bf16 %v32_v13, %v19_v12  ;;  %v57_v16 = vld [vmem:[%s1851_s1 + $0x140] sm:$0xff]  ;;  %v59_v18 = vld [vmem:[%s1851_s1 + $0x150] sm:$0xff] }
   0x5   :  { %942 = vmatprep.subr.bf16.mxu1 %v941_v10  ;;  %v913_v19 = vpack.c.bf16 %v57_v16, %v44_v14  ;;  %v945_v20 = vpack.c.bf16 %v59_v18, %v46_v17  ;;  %v43_v21 = vld [vmem:[%s1851_s1 + $0xd0] sm:$0xff]  ;;  %v56_v22 = vld [vmem:[%s1851_s1 + $0x138] sm:$0xff]  ;;  %v45_v23 = vld [vmem:[%s1851_s1 + $0xe0] sm:$0xff] }
   0x6   :  { %912 = vmatpush1.bf16.msra.mxu0 %v911_v11  ;;  %944 = vmatpush1.bf16.msra.mxu1 %v943_v15  ;;  %v915_v24 = vpack.c.bf16 %v56_v22, %v43_v21  ;;  %v58_v25 = vld [vmem:[%s1851_s1 + $0x148] sm:$0xff]  ;;  %v83_v27 = vld [vmem:[%s1851_s1 + $0x210] sm:$0xff]  ;;  %v72_v30 = vld [vmem:[%s1851_s1 + $0x1b8] sm:$0xff] }
   0x7   :  { %v70_v26 = vld [vmem:[%s1851_s1 + $0x1a8] sm:$0xff]  ;;  %914 = vmatprep.subr.bf16.mxu0 %v913_v19  ;;  %946 = vmatprep.subr.bf16.mxu1 %v945_v20  ;;  %v947_v28 = vpack.c.bf16 %v58_v25, %v45_v23  ;;  %v85_v31 = vld [vmem:[%s1851_s1 + $0x220] sm:$0xff]  ;;  %v71_v35 = vld [vmem:[%s1851_s1 + $0x1b0] sm:$0xff] }
   0x8   :  { %v917_v29 = vpack.c.bf16 %v83_v27, %v70_v26  ;;  %v69_v32 = vld [vmem:[%s1851_s1 + $0x1a0] sm:$0xff]  ;;  %v949_v33 = vpack.c.bf16 %v85_v31, %v72_v30  ;;  %v82_v34 = vld [vmem:[%s1851_s1 + $0x208] sm:$0xff]  ;;  %v84_v36 = vld [vmem:[%s1851_s1 + $0x218] sm:$0xff] }
   0x9   :  { %v919_v37 = vpack.c.bf16 %v82_v34, %v69_v32  ;;  %v96_v38 = vld [vmem:[%s1851_s1 + $0x278] sm:$0xff]  ;;  %v109_v39 = vld [vmem:[%s1851_s1 + $0x2e0] sm:$0xff]  ;;  %v98_v40 = vld [vmem:[%s1851_s1 + $0x288] sm:$0xff]  ;;  %v951_v41 = vpack.c.bf16 %v84_v36, %v71_v35 }
   0xa   :  { %916 = vmatpush1.bf16.msra.mxu0 %v915_v24  ;;  %948 = vmatpush1.bf16.msra.mxu1 %v947_v28  ;;  %v921_v42 = vpack.c.bf16 %v109_v39, %v96_v38  ;;  %v111_v43 = vld [vmem:[%s1851_s1 + $0x2f0] sm:$0xff]  ;;  %v108_v45 = vld [vmem:[%s1851_s1 + $0x2d8] sm:$0xff]  ;;  %v97_v47 = vld [vmem:[%s1851_s1 + $0x280] sm:$0xff] }
   0xb   :  { %918 = vmatprep.subr.bf16.mxu0 %v917_v29  ;;  %v95_v44 = vld [vmem:[%s1851_s1 + $0x270] sm:$0xff]  ;;  %950 = vmatprep.subr.bf16.mxu1 %v949_v33  ;;  %v953_v46 = vpack.c.bf16 %v111_v43, %v98_v40  ;;  %v110_v48 = vld [vmem:[%s1851_s1 + $0x2e8] sm:$0xff]  ;;  %v124_v51 = vld [vmem:[%s1851_s1 + $0x358] sm:$0xff] }
   0xc   :  { %v122_v49 = vld [vmem:[%s1851_s1 + $0x348] sm:$0xff]  ;;  %v135_v50 = vld [vmem:[%s1851_s1 + $0x3b0] sm:$0xff]  ;;  %v137_v52 = vld [vmem:[%s1851_s1 + $0x3c0] sm:$0xff]  ;;  %v923_v53 = vpack.c.bf16 %v108_v45, %v95_v44  ;;  %v955_v54 = vpack.c.bf16 %v110_v48, %v97_v47 }
   0xd   :  { %v925_v55 = vpack.c.bf16 %v135_v50, %v122_v49  ;;  %v121_v56 = vld [vmem:[%s1851_s1 + $0x340] sm:$0xff]  ;;  %v134_v57 = vld [vmem:[%s1851_s1 + $0x3a8] sm:$0xff]  ;;  %v123_v58 = vld [vmem:[%s1851_s1 + $0x350] sm:$0xff]  ;;  %v957_v59 = vpack.c.bf16 %v137_v52, %v124_v51 }
   0xe   :  { %920 = vmatpush1.bf16.msra.mxu0 %v919_v37  ;;  %952 = vmatpush1.bf16.msra.mxu1 %v951_v41  ;;  %v136_v60 = vld [vmem:[%s1851_s1 + $0x3b8] sm:$0xff]  ;;  %v161_v62 = vld [vmem:[%s1851_s1 + $0x480] sm:$0xff]  ;;  %v150_v63 = vld [vmem:[%s1851_s1 + $0x428] sm:$0xff]  ;;  %v927_v1 = vpack.c.bf16 %v134_v57, %v121_v56 }
   0xf   :  { %922 = vmatprep.subr.bf16.mxu0 %v921_v42  ;;  %954 = vmatprep.subr.bf16.mxu1 %v953_v46  ;;  %v148_v61 = vld [vmem:[%s1851_s1 + $0x418] sm:$0xff]  ;;  %v163_v0 = vld [vmem:[%s1851_s1 + $0x490] sm:$0xff]  ;;  %v959_v2 = vpack.c.bf16 %v136_v60, %v123_v58  ;;  %v149_v7 = vld [vmem:[%s1851_s1 + $0x420] sm:$0xff] }
  0x10   :  { %v929_v4 = vpack.c.bf16 %v161_v62, %v148_v61  ;;  %v147_v5 = vld [vmem:[%s1851_s1 + $0x410] sm:$0xff]  ;;  %v160_v6 = vld [vmem:[%s1851_s1 + $0x478] sm:$0xff]  ;;  %v961_v8 = vpack.c.bf16 %v163_v0, %v150_v63  ;;  %v162_v9 = vld [vmem:[%s1851_s1 + $0x488] sm:$0xff] }
  0x11   :  { %v174_v10 = vld [vmem:[%s1851_s1 + $0x4e8] sm:$0xff]  ;;  %v187_v11 = vld [vmem:[%s1851_s1 + $0x550] sm:$0xff]  ;;  %v176_v12 = vld [vmem:[%s1851_s1 + $0x4f8] sm:$0xff]  ;;  %v931_v14 = vpack.c.bf16 %v160_v6, %v147_v5  ;;  %v963_v15 = vpack.c.bf16 %v162_v9, %v149_v7 }
  0x12   :  { %924 = vmatpush1.bf16.msra.mxu0 %v923_v53  ;;  %956 = vmatpush1.bf16.msra.mxu1 %v955_v54  ;;  %v189_v13 = vld [vmem:[%s1851_s1 + $0x560] sm:$0xff]  ;;  %v933_v16 = vpack.c.bf16 %v187_v11, %v174_v10  ;;  %v186_v18 = vld [vmem:[%s1851_s1 + $0x548] sm:$0xff]  ;;  %v175_v19 = vld [vmem:[%s1851_s1 + $0x4f0] sm:$0xff] }
  0x13   :  { %926 = vmatprep.subr.bf16.mxu0 %v925_v55  ;;  %958 = vmatprep.subr.bf16.mxu1 %v957_v59  ;;  %v173_v17 = vld [vmem:[%s1851_s1 + $0x4e0] sm:$0xff]  ;;  %v965_v20 = vpack.c.bf16 %v189_v13, %v176_v12  ;;  %v188_v21 = vld [vmem:[%s1851_s1 + $0x558] sm:$0xff]  ;;  %v202_v24 = vld [vmem:[%s1851_s1 + $0x5c8] sm:$0xff] }
  0x14   :  { %v200_v22 = vld [vmem:[%s1851_s1 + $0x5b8] sm:$0xff]  ;;  %v213_v23 = vld [vmem:[%s1851_s1 + $0x620] sm:$0xff]  ;;  %v215_v25 = vld [vmem:[%s1851_s1 + $0x630] sm:$0xff]  ;;  %v935_v26 = vpack.c.bf16 %v186_v18, %v173_v17  ;;  %v967_v27 = vpack.c.bf16 %v188_v21, %v175_v19 }
  0x15   :  { %v937_v28 = vpack.c.bf16 %v213_v23, %v200_v22  ;;  %v199_v29 = vld [vmem:[%s1851_s1 + $0x5b0] sm:$0xff]  ;;  %v212_v30 = vld [vmem:[%s1851_s1 + $0x618] sm:$0xff]  ;;  %v201_v31 = vld [vmem:[%s1851_s1 + $0x5c0] sm:$0xff]  ;;  %v969_v32 = vpack.c.bf16 %v215_v25, %v202_v24 }
  0x16   :  { %928 = vmatpush1.bf16.msra.mxu0 %v927_v1  ;;  %960 = vmatpush1.bf16.msra.mxu1 %v959_v2  ;;  %v214_v33 = vld [vmem:[%s1851_s1 + $0x628] sm:$0xff]  ;;  %v35_v35 = vld [vmem:[%s1851_s1 + $0x90] sm:$0xff]  ;;  %v24_v36 = vld [vmem:[%s1851_s1 + $0x38] sm:$0xff]  ;;  %v939_v38 = vpack.c.bf16 %v212_v30, %v199_v29 }
  0x17   :  { %930 = vmatprep.subr.bf16.mxu0 %v929_v4  ;;  %962 = vmatprep.subr.bf16.mxu1 %v961_v8  ;;  %v22_v34 = vld [vmem:[%s1851_s1 + $0x28] sm:$0xff]  ;;  %v37_v37 = vld [vmem:[%s1851_s1 + $0xa0] sm:$0xff]  ;;  %v971_v39 = vpack.c.bf16 %v214_v33, %v201_v31  ;;  %v23_v43 = vld [vmem:[%s1851_s1 + $0x30] sm:$0xff] }
  0x18   :  { %v973_v40 = vpack.c.bf16 %v35_v35, %v22_v34  ;;  %v21_v41 = vld [vmem:[%s1851_s1 + $0x20] sm:$0xff]  ;;  %v34_v42 = vld [vmem:[%s1851_s1 + $0x88] sm:$0xff]  ;;  %v1005_v44 = vpack.c.bf16 %v37_v37, %v24_v36  ;;  %v36_v45 = vld [vmem:[%s1851_s1 + $0x98] sm:$0xff] }
  0x19   :  { %v48_v46 = vld [vmem:[%s1851_s1 + $0xf8] sm:$0xff]  ;;  %v61_v47 = vld [vmem:[%s1851_s1 + $0x160] sm:$0xff]  ;;  %v50_v48 = vld [vmem:[%s1851_s1 + $0x108] sm:$0xff]  ;;  %v975_v51 = vpack.c.bf16 %v34_v42, %v21_v41  ;;  %v1007_v52 = vpack.c.bf16 %v36_v45, %v23_v43 }
  0x1a   :  { %932 = vmatpush1.bf16.msra.mxu0 %v931_v14  ;;  %964 = vmatpush1.bf16.msra.mxu1 %v963_v15  ;;  %v63_v49 = vld [vmem:[%s1851_s1 + $0x170] sm:$0xff]  ;;  %v1418_v50 = vld [vmem:[%s1853_s0] sm:$0x1]  ;;  %v977_v53 = vpack.c.bf16 %v61_v47, %v48_v46  ;;  %v60_v55 = vld [vmem:[%s1851_s1 + $0x158] sm:$0xff] }
  0x1b   :  { %934 = vmatprep.subr.bf16.mxu0 %v933_v16  ;;  %966 = vmatprep.subr.bf16.mxu1 %v965_v20  ;;  %v47_v54 = vld [vmem:[%s1851_s1 + $0xf0] sm:$0xff]  ;;  %v49_v56 = vld [vmem:[%s1851_s1 + $0x100] sm:$0xff]  ;;  %v1009_v57 = vpack.c.bf16 %v63_v49, %v50_v48  ;;  %v62_v58 = vld [vmem:[%s1851_s1 + $0x168] sm:$0xff] }
  0x1c   :  { %v74_v59 = vld [vmem:[%s1851_s1 + $0x1c8] sm:$0xff]  ;;  %v87_v60 = vld [vmem:[%s1851_s1 + $0x230] sm:$0xff]  ;;  %v76_v61 = vld [vmem:[%s1851_s1 + $0x1d8] sm:$0xff]  ;;  %v979_v63 = vpack.c.bf16 %v60_v55, %v47_v54  ;;  %v1011_v0 = vpack.c.bf16 %v62_v58, %v49_v56 }
  0x1d   :  { %v89_v62 = vld [vmem:[%s1851_s1 + $0x240] sm:$0xff]  ;;  %v981_v1 = vpack.c.bf16 %v87_v60, %v74_v59  ;;  %v86_v4 = vld [vmem:[%s1851_s1 + $0x228] sm:$0xff]  ;;  %v75_v5 = vld [vmem:[%s1851_s1 + $0x1d0] sm:$0xff] }
  0x1e   :  { %936 = vmatpush1.bf16.msra.mxu0 %v935_v26  ;;  %968 = vmatpush1.bf16.msra.mxu1 %v967_v27  ;;  %v73_v2 = vld [vmem:[%s1851_s1 + $0x1c0] sm:$0xff]  ;;  %v1013_v6 = vpack.c.bf16 %v89_v62, %v76_v61  ;;  %v88_v7 = vld [vmem:[%s1851_s1 + $0x238] sm:$0xff]  ;;  %v102_v10 = vld [vmem:[%s1851_s1 + $0x2a8] sm:$0xff] }
  0x1f   :  { %938 = vmatprep.subr.bf16.mxu0 %v937_v28  ;;  %970 = vmatprep.subr.bf16.mxu1 %v969_v32  ;;  %v100_v8 = vld [vmem:[%s1851_s1 + $0x298] sm:$0xff]  ;;  %v113_v9 = vld [vmem:[%s1851_s1 + $0x300] sm:$0xff]  ;;  %v115_v11 = vld [vmem:[%s1851_s1 + $0x310] sm:$0xff]  ;;  %v983_v12 = vpack.c.bf16 %v86_v4, %v73_v2  ;;  %v1015_v13 = vpack.c.bf16 %v88_v7, %v75_v5 }
  0x20   :  { %v985_v14 = vpack.c.bf16 %v113_v9, %v100_v8  ;;  %v99_v15 = vld [vmem:[%s1851_s1 + $0x290] sm:$0xff]  ;;  %v112_v16 = vld [vmem:[%s1851_s1 + $0x2f8] sm:$0xff]  ;;  %v101_v17 = vld [vmem:[%s1851_s1 + $0x2a0] sm:$0xff]  ;;  %v1017_v18 = vpack.c.bf16 %v115_v11, %v102_v10 }
  0x21   :  { %v114_v19 = vld [vmem:[%s1851_s1 + $0x308] sm:$0xff]  ;;  %v139_v21 = vld [vmem:[%s1851_s1 + $0x3d0] sm:$0xff]  ;;  %v128_v22 = vld [vmem:[%s1851_s1 + $0x378] sm:$0xff]  ;;  %v987_v24 = vpack.c.bf16 %v112_v16, %v99_v15 }
  0x22   :  { %940 = vmatpush1.bf16.msra.mxu0 %v939_v38  ;;  %972 = vmatpush1.bf16.msra.mxu1 %v971_v39  ;;  %v126_v20 = vld [vmem:[%s1851_s1 + $0x368] sm:$0xff]  ;;  %v141_v23 = vld [vmem:[%s1851_s1 + $0x3e0] sm:$0xff]  ;;  %v1019_v25 = vpack.c.bf16 %v114_v19, %v101_v17  ;;  %v127_v29 = vld [vmem:[%s1851_s1 + $0x370] sm:$0xff] }
  0x23   :  { %974 = vmatprep.subr.bf16.mxu0 %v973_v40  ;;  %1006 = vmatprep.subr.bf16.mxu1 %v1005_v44  ;;  %v989_v26 = vpack.c.bf16 %v139_v21, %v126_v20  ;;  %v125_v27 = vld [vmem:[%s1851_s1 + $0x360] sm:$0xff]  ;;  %v138_v28 = vld [vmem:[%s1851_s1 + $0x3c8] sm:$0xff]  ;;  %v1021_v30 = vpack.c.bf16 %v141_v23, %v128_v22  ;;  %v140_v31 = vld [vmem:[%s1851_s1 + $0x3d8] sm:$0xff] }
  0x24   :  { %v152_v32 = vld [vmem:[%s1851_s1 + $0x438] sm:$0xff]  ;;  %v165_v33 = vld [vmem:[%s1851_s1 + $0x4a0] sm:$0xff]  ;;  %v154_v34 = vld [vmem:[%s1851_s1 + $0x448] sm:$0xff]  ;;  %v991_v36 = vpack.c.bf16 %v138_v28, %v125_v27  ;;  %v1023_v37 = vpack.c.bf16 %v140_v31, %v127_v29 }
  0x25   :  { %300 = vmatmul.mubr.f32.vlgmr.msra.gmra.mrb[0].mxu0 %v1418_v50  ;;  %371 = vmatmul.mubr.f32.vlgmr.msra.gmra.mrb[0].mxu1 %v1418_v50  ;;  %v167_v35 = vld [vmem:[%s1851_s1 + $0x4b0] sm:$0xff]  ;;  %v993_v38 = vpack.c.bf16 %v165_v33, %v152_v32  ;;  %v164_v40 = vld [vmem:[%s1851_s1 + $0x498] sm:$0xff]  ;;  %v153_v41 = vld [vmem:[%s1851_s1 + $0x440] sm:$0xff] }
  0x26   :  { %976 = vmatpush1.bf16.msra.mxu0 %v975_v51  ;;  %1008 = vmatpush1.bf16.msra.mxu1 %v1007_v52  ;;  %v151_v39 = vld [vmem:[%s1851_s1 + $0x430] sm:$0xff]  ;;  %v1025_v42 = vpack.c.bf16 %v167_v35, %v154_v34  ;;  %v166_v43 = vld [vmem:[%s1851_s1 + $0x4a8] sm:$0xff]  ;;  %v180_v46 = vld [vmem:[%s1851_s1 + $0x518] sm:$0xff] }
  0x27   :  { %978 = vmatprep.subr.bf16.mxu0 %v977_v53  ;;  %1010 = vmatprep.subr.bf16.mxu1 %v1009_v57  ;;  %v178_v44 = vld [vmem:[%s1851_s1 + $0x508] sm:$0xff]  ;;  %v191_v45 = vld [vmem:[%s1851_s1 + $0x570] sm:$0xff]  ;;  %v193_v47 = vld [vmem:[%s1851_s1 + $0x580] sm:$0xff]  ;;  %v995_v48 = vpack.c.bf16 %v164_v40, %v151_v39  ;;  %v1027_v49 = vpack.c.bf16 %v166_v43, %v153_v41 }
  0x28   :  { %441 = vmatprep.mubr.f32.mxu0 %v1157_v3  ;;  %512 = vmatprep.mubr.f32.mxu1 %v1157_v3  ;;  %v997_v51 = vpack.c.bf16 %v191_v45, %v178_v44  ;;  %v177_v52 = vld [vmem:[%s1851_s1 + $0x500] sm:$0xff]  ;;  %v190_v53 = vld [vmem:[%s1851_s1 + $0x568] sm:$0xff]  ;;  %v179_v54 = vld [vmem:[%s1851_s1 + $0x510] sm:$0xff]  ;;  %v1029_v55 = vpack.c.bf16 %v193_v47, %v180_v46 }
  0x29   :  { %v192_v56 = vld [vmem:[%s1851_s1 + $0x578] sm:$0xff]  ;;  %v217_v58 = vld [vmem:[%s1851_s1 + $0x640] sm:$0xff]  ;;  %v206_v59 = vld [vmem:[%s1851_s1 + $0x5e8] sm:$0xff]  ;;  %v999_v61 = vpack.c.bf16 %v190_v53, %v177_v52 }
  0x2a   :  { %980 = vmatpush1.bf16.msra.mxu0 %v979_v63  ;;  %1012 = vmatpush1.bf16.msra.mxu1 %v1011_v0  ;;  %v204_v57 = vld [vmem:[%s1851_s1 + $0x5d8] sm:$0xff]  ;;  %v219_v60 = vld [vmem:[%s1851_s1 + $0x650] sm:$0xff]  ;;  %v1031_v62 = vpack.c.bf16 %v192_v56, %v179_v54  ;;  %v205_v2 = vld [vmem:[%s1851_s1 + $0x5e0] sm:$0xff] }
  0x2b   :  { %982 = vmatprep.subr.bf16.mxu0 %v981_v1  ;;  %1014 = vmatprep.subr.bf16.mxu1 %v1013_v6  ;;  %v1001_v63 = vpack.c.bf16 %v217_v58, %v204_v57  ;;  %v203_v0 = vld [vmem:[%s1851_s1 + $0x5d0] sm:$0xff]  ;;  %v216_v1 = vld [vmem:[%s1851_s1 + $0x638] sm:$0xff]  ;;  %v1033_v4 = vpack.c.bf16 %v219_v60, %v206_v59  ;;  %v218_v5 = vld [vmem:[%s1851_s1 + $0x648] sm:$0xff] }
  0x2c   :  { %v26_v6 = vld [vmem:[%s1851_s1 + $0x48] sm:$0xff]  ;;  %v39_v7 = vld [vmem:[%s1851_s1 + $0xb0] sm:$0xff]  ;;  %v28_v8 = vld [vmem:[%s1851_s1 + $0x58] sm:$0xff]  ;;  %v1003_v10 = vpack.c.bf16 %v216_v1, %v203_v0  ;;  %v1035_v11 = vpack.c.bf16 %v218_v5, %v205_v2 }
  0x2d   :  { %v41_v9 = vld [vmem:[%s1851_s1 + $0xc0] sm:$0xff]  ;;  %v27_v15 = vld [vmem:[%s1851_s1 + $0x50] sm:$0xff]  ;;  %v40_v17 = vld [vmem:[%s1851_s1 + $0xb8] sm:$0xff] }
  0x2e   :  { %984 = vmatpush1.bf16.msra.mxu0 %v983_v12  ;;  %1016 = vmatpush1.bf16.msra.mxu1 %v1015_v13  ;;  %v1037_v12 = vpack.c.bf16 %v39_v7, %v26_v6  ;;  %v25_v13 = vld [vmem:[%s1851_s1 + $0x40] sm:$0xff]  ;;  %v1069_v16 = vpack.c.bf16 %v41_v9, %v28_v8  ;;  %v54_v20 = vld [vmem:[%s1851_s1 + $0x128] sm:$0xff]  ;;  %v67_v21 = vld [vmem:[%s1851_s1 + $0x190] sm:$0xff]  ;;  %v1071_v23 = vpack.c.bf16 %v40_v17, %v27_v15 }
  0x2f   :  { %986 = vmatprep.subr.bf16.mxu0 %v985_v14  ;;  %1018 = vmatprep.subr.bf16.mxu1 %v1017_v18  ;;  %v38_v14 = vld [vmem:[%s1851_s1 + $0xa8] sm:$0xff]  ;;  %v52_v18 = vld [vmem:[%s1851_s1 + $0x118] sm:$0xff]  ;;  %v65_v19 = vld [vmem:[%s1851_s1 + $0x180] sm:$0xff]  ;;  %v1073_v28 = vpack.c.bf16 %v67_v21, %v54_v20 }
  0x30   :  { %v1039_v22 = vpack.c.bf16 %v38_v14, %v25_v13  ;;  %v53_v27 = vld [vmem:[%s1851_s1 + $0x120] sm:$0xff]  ;;  %v66_v29 = vld [vmem:[%s1851_s1 + $0x188] sm:$0xff]  ;;  %v91_v31 = vld [vmem:[%s1851_s1 + $0x250] sm:$0xff] }
  0x31   :  { %v80_v32 = vld [vmem:[%s1851_s1 + $0x1f8] sm:$0xff]  ;;  %v93_v33 = vld [vmem:[%s1851_s1 + $0x260] sm:$0xff]  ;;  %v90_v39 = vld [vmem:[%s1851_s1 + $0x248] sm:$0xff] }
  0x32   :  { %988 = vmatpush1.bf16.msra.mxu0 %v987_v24  ;;  %1020 = vmatpush1.bf16.msra.mxu1 %v1019_v25  ;;  %v1041_v24 = vpack.c.bf16 %v65_v19, %v52_v18  ;;  %v51_v25 = vld [vmem:[%s1851_s1 + $0x110] sm:$0xff]  ;;  %v225_v35 = vld [vmem:[#allocation2] sm:$0x1]  ;;  %v1077_v41 = vpack.c.bf16 %v93_v33, %v80_v32  ;;  %v104_v43 = vld [vmem:[%s1851_s1 + $0x2b8] sm:$0xff] }
  0x33   :  { %990 = vmatprep.subr.bf16.mxu0 %v989_v26  ;;  %1022 = vmatprep.subr.bf16.mxu1 %v1021_v30  ;;  %v64_v26 = vld [vmem:[%s1851_s1 + $0x178] sm:$0xff]  ;;  %v78_v30 = vld [vmem:[%s1851_s1 + $0x1e8] sm:$0xff]  ;;  %v79_v40 = vld [vmem:[%s1851_s1 + $0x1f0] sm:$0xff] }
  0x34   :  { %v1043_v34 = vpack.c.bf16 %v64_v26, %v51_v25  ;;  %v117_v44 = vld [vmem:[%s1851_s1 + $0x320] sm:$0xff]  ;;  %v106_v45 = vld [vmem:[%s1851_s1 + $0x2c8] sm:$0xff]  ;;  %v119_v46 = vld [vmem:[%s1851_s1 + $0x330] sm:$0xff]  ;;  %228 = vperm.xlu0 %1130, %v225_v35  }
  0x35   :  { %v116_v52 = vld [vmem:[%s1851_s1 + $0x318] sm:$0xff]  ;;  %v105_v53 = vld [vmem:[%s1851_s1 + $0x2c0] sm:$0xff]  ;;  %v1081_v54 = vpack.c.bf16 %v119_v46, %v106_v45  ;;  %v130_v56 = vld [vmem:[%s1851_s1 + $0x388] sm:$0xff]  ;;  %v1159_v46 = vmov 0.0|0.0  }
  0x36   :  { %992 = vmatpush1.bf16.msra.mxu0 %v991_v36  ;;  %1024 = vmatpush1.bf16.msra.mxu1 %v1023_v37  ;;  %v1075_v36 = vpack.c.bf16 %v66_v29, %v53_v27  ;;  %v1045_v37 = vpack.c.bf16 %v91_v31, %v78_v30  ;;  %v143_v57 = vld [vmem:[%s1851_s1 + $0x3f0] sm:$0xff]  ;;  %v132_v58 = vld [vmem:[%s1851_s1 + $0x398] sm:$0xff]  ;;  %v145_v59 = vld [vmem:[%s1851_s1 + $0x400] sm:$0xff] }
  0x37   :  { %994 = vmatprep.subr.bf16.mxu0 %v993_v38  ;;  %1026 = vmatprep.subr.bf16.mxu1 %v1025_v42  ;;  %v77_v38 = vld [vmem:[%s1851_s1 + $0x1e0] sm:$0xff]  ;;  %v92_v42 = vld [vmem:[%s1851_s1 + $0x258] sm:$0xff]  ;;  %v142_v0 = vld [vmem:[%s1851_s1 + $0x3e8] sm:$0xff]  ;;  %v1085_v2 = vpack.c.bf16 %v145_v59, %v132_v58 }
  0x38   :  { %v1047_v47 = vpack.c.bf16 %v90_v39, %v77_v38  ;;  %v131_v1 = vld [vmem:[%s1851_s1 + $0x390] sm:$0xff]  ;;  %v156_v5 = vld [vmem:[%s1851_s1 + $0x458] sm:$0xff]  ;;  %v169_v6 = vld [vmem:[%s1851_s1 + $0x4c0] sm:$0xff] }
  0x39   :  { %v158_v7 = vld [vmem:[%s1851_s1 + $0x468] sm:$0xff]  ;;  %v171_v8 = vld [vmem:[%s1851_s1 + $0x4d0] sm:$0xff]  ;;  %v168_v13 = vld [vmem:[%s1851_s1 + $0x4b8] sm:$0xff] }
  0x3a   :  { %996 = vmatpush1.bf16.msra.mxu0 %v995_v48  ;;  %1028 = vmatpush1.bf16.msra.mxu1 %v1027_v49  ;;  %v1079_v48 = vpack.c.bf16 %v92_v42, %v79_v40  ;;  %v1049_v49 = vpack.c.bf16 %v117_v44, %v104_v43  ;;  %v157_v14 = vld [vmem:[%s1851_s1 + $0x460] sm:$0xff]  ;;  %v1089_v15 = vpack.c.bf16 %v171_v8, %v158_v7  ;;  %v182_v17 = vld [vmem:[%s1851_s1 + $0x528] sm:$0xff]  ;;  %v195_v18 = vld [vmem:[%s1851_s1 + $0x590] sm:$0xff] }
  0x3b   :  { %998 = vmatprep.subr.bf16.mxu0 %v997_v51  ;;  %1030 = vmatprep.subr.bf16.mxu1 %v1029_v55  ;;  %v103_v51 = vld [vmem:[%s1851_s1 + $0x2b0] sm:$0xff]  ;;  %v118_v55 = vld [vmem:[%s1851_s1 + $0x328] sm:$0xff]  ;;  %v184_v19 = vld [vmem:[%s1851_s1 + $0x538] sm:$0xff] }
  0x3c   :  { %v1051_v60 = vpack.c.bf16 %v116_v52, %v103_v51  ;;  %v197_v20 = vld [vmem:[%s1851_s1 + $0x5a0] sm:$0xff]  ;;  %v194_v25 = vld [vmem:[%s1851_s1 + $0x588] sm:$0xff]  ;;  %v183_v26 = vld [vmem:[%s1851_s1 + $0x530] sm:$0xff] }
  0x3d   :  { %v1093_v27 = vpack.c.bf16 %v197_v20, %v184_v19  ;;  %v208_v29 = vld [vmem:[%s1851_s1 + $0x5f8] sm:$0xff]  ;;  %v221_v30 = vld [vmem:[%s1851_s1 + $0x660] sm:$0xff]  ;;  %v210_v31 = vld [vmem:[%s1851_s1 + $0x608] sm:$0xff] }
  0x3e   :  { %1000 = vmatpush1.bf16.msra.mxu0 %v999_v61  ;;  %1032 = vmatpush1.bf16.msra.mxu1 %v1031_v62  ;;  %v1083_v61 = vpack.c.bf16 %v118_v55, %v105_v53  ;;  %v1053_v62 = vpack.c.bf16 %v143_v57, %v130_v56  ;;  %v223_v32 = vld [vmem:[%s1851_s1 + $0x670] sm:$0xff]  ;;  %v1065_v35 = vpack.c.bf16 %v221_v30, %v208_v29  ;;  %v209_v39 = vld [vmem:[%s1851_s1 + $0x600] sm:$0xff]  ;;  %v222_v40 = vld [vmem:[%s1851_s1 + $0x668] sm:$0xff] }
  0x3f   :  { %1002 = vmatprep.subr.bf16.mxu0 %v1001_v63  ;;  %1034 = vmatprep.subr.bf16.mxu1 %v1033_v4  ;;  %v129_v63 = vld [vmem:[%s1851_s1 + $0x380] sm:$0xff]  ;;  %v144_v4 = vld [vmem:[%s1851_s1 + $0x3f8] sm:$0xff]  ;;  %v1097_v38 = vpack.c.bf16 %v223_v32, %v210_v31  ;;  %v1099_v42 = vpack.c.bf16 %v222_v40, %v209_v39  ;;  %v42_v44 = vld [vmem:[%s1851_s1 + $0xc8] sm:$0xff] }
  0x40   :  { %v1055_v9 = vpack.c.bf16 %v142_v0, %v129_v63  ;;  %v29_v43 = vld [vmem:[%s1851_s1 + $0x60] sm:$0xff]  ;;  %v94_v52 = vld [vmem:[%s1851_s1 + $0x268] sm:$0xff]  ;;  %v120_v55 = vld [vmem:[%s1851_s1 + $0x338] sm:$0xff] }
  0x41   :  { %v1102_v45 = vpack.c.bf16 %v42_v44, %v29_v43  ;;  %v81_v51 = vld [vmem:[%s1851_s1 + $0x200] sm:$0xff]  ;;  %v159_v59 = vld [vmem:[%s1851_s1 + $0x470] sm:$0xff]  ;;  %v198_v63 = vld [vmem:[%s1851_s1 + $0x5a8] sm:$0xff] }
  0x42   :  { %1004 = vmatpush1.bf16.msra.mxu0 %v1003_v10  ;;  %1036 = vmatpush1.bf16.msra.mxu1 %v1035_v11  ;;  %v1087_v10 = vpack.c.bf16 %v144_v4, %v131_v1  ;;  %v1057_v11 = vpack.c.bf16 %v169_v6, %v156_v5  ;;  %v1108_v53 = vpack.c.bf16 %v94_v52, %v81_v51  ;;  %v133_v57 = vld [vmem:[%s1851_s1 + $0x3a0] sm:$0xff]  ;;  %v211_v1 = vld [vmem:[%s1851_s1 + $0x610] sm:$0xff]  ;;  %v231_v5 = vlaneseq }
  0x43   :  { %1038 = vmatprep.subr.bf16.mxu0 %v1037_v12  ;;  %1070 = vmatprep.subr.bf16.mxu1 %v1069_v16  ;;  %v155_v12 = vld [vmem:[%s1851_s1 + $0x450] sm:$0xff]  ;;  %v170_v16 = vld [vmem:[%s1851_s1 + $0x4c8] sm:$0xff] }
  0x44   :  { %v1059_v21 = vpack.c.bf16 %v168_v13, %v155_v12  ;;  %v232_v6 = vshrl.u32 %v231_v5, 7  ;;  %vm850_vm1 = vcmp.lt.s32.totalorder %v231_v5, 544 }
  0x45   :  { %442 = vmatmul.mubr.f32.vlgmr.msra.gmra.mrb[2].mxu0 %v1418_v50  ;;  %513 = vmatmul.mubr.f32.vlgmr.msra.gmra.mrb[2].mxu1 %v1418_v50 }
  0x46   :  { %1040 = vmatpush1.bf16.msra.mxu0 %v1039_v22  ;;  %1072 = vmatpush1.bf16.msra.mxu1 %v1071_v23  ;;  %v1091_v22 = vpack.c.bf16 %v170_v16, %v157_v14  ;;  %v1061_v23 = vpack.c.bf16 %v195_v18, %v182_v17  ;;  %v233_v7 = vsub.s32 0, %v232_v6  ;;  %v1161_v17 = vmov 1966171168  }
  0x47   :  { %1042 = vmatprep.subr.bf16.mxu0 %v1041_v24  ;;  %1074 = vmatprep.subr.bf16.mxu1 %v1073_v28  ;;  %v181_v24 = vld [vmem:[%s1851_s1 + $0x520] sm:$0xff]  ;;  %v196_v28 = vld [vmem:[%s1851_s1 + $0x598] sm:$0xff]  ;;  %v762_v18 = vunpack.c.l.s4 %v1161_v17 }
  0x48   :  { %583 = vmatprep.mubr.f32.mxu0 %v1157_v3  ;;  %654 = vmatprep.mubr.f32.mxu1 %v1157_v3  ;;  %v1063_v33 = vpack.c.bf16 %v194_v25, %v181_v24 }
  0x49   :  { %v763_v19 = vunpack.c.0.s8 %v762_v18 }
  0x4a   :  { %1044 = vmatpush1.bf16.msra.mxu0 %v1043_v34  ;;  %1076 = vmatpush1.bf16.msra.mxu1 %v1075_v36  ;;  %v1095_v34 = vpack.c.bf16 %v196_v28, %v183_v26  ;;  %v207_v36 = vld [vmem:[%s1851_s1 + $0x5f0] sm:$0xff] }
  0x4b   :  { %1046 = vmatprep.subr.bf16.mxu0 %v1045_v37  ;;  %1078 = vmatprep.subr.bf16.mxu1 %v1077_v41  ;;  %v220_v37 = vld [vmem:[%s1851_s1 + $0x658] sm:$0xff] }
  0x4c   :  { %v1067_v41 = vpack.c.bf16 %v220_v37, %v207_v36 }
  0x4e   :  { %1048 = vmatpush1.bf16.msra.mxu0 %v1047_v47  ;;  %1080 = vmatpush1.bf16.msra.mxu1 %v1079_v48  ;;  %v55_v47 = vld [vmem:[%s1851_s1 + $0x130] sm:$0xff]  ;;  %v68_v48 = vld [vmem:[%s1851_s1 + $0x198] sm:$0xff] }
  0x4f   :  { %1050 = vmatprep.subr.bf16.mxu0 %v1049_v49  ;;  %1082 = vmatprep.subr.bf16.mxu1 %v1081_v54  ;;  %v1105_v49 = vpack.c.bf16 %v68_v48, %v55_v47  ;;  %v107_v54 = vld [vmem:[%s1851_s1 + $0x2d0] sm:$0xff] }
  0x50   :  { %v1111_v56 = vpack.c.bf16 %v120_v55, %v107_v54 }
  0x52   :  { %1052 = vmatpush1.bf16.msra.mxu0 %v1051_v60  ;;  %1084 = vmatpush1.bf16.msra.mxu1 %v1083_v61  ;;  %v172_v60 = vld [vmem:[%s1851_s1 + $0x4d8] sm:$0xff] }
  0x53   :  { %1054 = vmatprep.subr.bf16.mxu0 %v1053_v62  ;;  %1086 = vmatprep.subr.bf16.mxu1 %v1085_v2  ;;  %v1117_v61 = vpack.c.bf16 %v172_v60, %v159_v59  ;;  %v185_v62 = vld [vmem:[%s1851_s1 + $0x540] sm:$0xff]  ;;  %v224_v2 = vld [vmem:[%s1851_s1 + $0x678] sm:$0xff] }
  0x54   :  { %v1120_v0 = vpack.c.bf16 %v198_v63, %v185_v62  ;;  %v1123_v4 = vpack.c.bf16 %v224_v2, %v211_v1 }
  0x56   :  { %1056 = vmatpush1.bf16.msra.mxu0 %v1055_v9  ;;  %1088 = vmatpush1.bf16.msra.mxu1 %v1087_v10 }
  0x57   :  { %1058 = vmatprep.subr.bf16.mxu0 %v1057_v11  ;;  %1090 = vmatprep.subr.bf16.mxu1 %v1089_v15 }
  0x5a   :  { %1060 = vmatpush1.bf16.msra.mxu0 %v1059_v21  ;;  %1092 = vmatpush1.bf16.msra.mxu1 %v1091_v22  ;;  %v766_v22 = vsub.s32 %v763_v19, %v232_v6 }
  0x5b   :  { %1062 = vmatprep.subr.bf16.mxu0 %v1061_v23  ;;  %1094 = vmatprep.subr.bf16.mxu1 %v1093_v27 }
  0x5e   :  { %1064 = vmatpush1.bf16.msra.mxu0 %v1063_v33  ;;  %1096 = vmatpush1.bf16.msra.mxu1 %v1095_v34 }
  0x5f   :  { %1066 = vmatprep.subr.bf16.mxu0 %v1065_v35  ;;  %1098 = vmatprep.subr.bf16.mxu1 %v1097_v38 }
  0x62   :  { %1068 = vmatpush1.bf16.msra.mxu0 %v1067_v41  ;;  %1100 = vmatpush1.bf16.msra.mxu1 %v1099_v42 }
  0x63   :  { %1101 = vmatprep.subr.bf16.mxu0 %v1159_v46 }
  0x65   :  { %584 = vmatmul.mubr.f32.vlgmr.msra.gmra.mrb[4].mxu0 %v1418_v50  ;;  %655 = vmatmul.mubr.f32.vlgmr.msra.gmra.mrb[4].mxu1 %v1418_v50 }
  0x66   :  { %1103 = vmatpush3.bf16.msra.mxu0 %v1102_v45  ;;  %906 = vmatprep.mubr.msk.f32.mxu0 %vm1160_vm0, %v1157_v3  ;;  %v146_v3 = vld [vmem:[%s1851_s1 + $0x408] sm:$0xff] }
  0x67   :  { %1104 = vmatprep.subr.bf16.mxu0 %v1159_v46  ;;  %v1114_v58 = vpack.c.bf16 %v146_v3, %v133_v57 }
  0x6a   :  { %1106 = vmatpush3.bf16.msra.mxu0 %v1105_v49 }
  0x6b   :  { %1107 = vmatprep.subr.bf16.mxu0 %v1159_v46 }
  0x6e   :  { %1109 = vmatpush3.bf16.msra.mxu0 %v1108_v53 }
  0x6f   :  { %1110 = vmatprep.subr.bf16.mxu0 %v1159_v46 }
  0x72   :  { %1112 = vmatpush3.bf16.msra.mxu0 %v1111_v56 }
  0x73   :  { %1113 = vmatprep.subr.bf16.mxu0 %v1159_v46 }
  0x76   :  { %1115 = vmatpush3.bf16.msra.mxu0 %v1114_v58 }
  0x77   :  { %1116 = vmatprep.subr.bf16.mxu0 %v1159_v46 }
  0x7a   :  { %1118 = vmatpush3.bf16.msra.mxu0 %v1117_v61 }
  0x7b   :  { %1119 = vmatprep.subr.bf16.mxu0 %v1159_v46 }
  0x7e   :  { %1121 = vmatpush3.bf16.msra.mxu0 %v1120_v0 }
  0x7f   :  { %1122 = vmatprep.subr.bf16.mxu0 %v1159_v46 }
  0x82   :  { %1124 = vmatpush3.bf16.msra.mxu0 %v1123_v4 }
  0x85   :  { %907 = vmatmul.mubr.f32.vlgmr.msra.gmra.mrb[6].mxu0 %v1418_v50 }
  0xb3   :  { %v229_v8 = vpop.permute.xlu0 %228 }
  0xb4   :  { %v1829_v9 = vrot.slane %v229_v8, %v233_v7 }
  0xf8   :  { %v301_v10 = vpop.f32.mrb[0].mxu0  ;;  %v372_v12 = vpop.f32.mrb[0].mxu1 }
  0xf9   :  { %v302_v11 = vadd.f32 %v301_v10, %v1829_v9  ;;  %v303_v13 = vpop.f32.mrb[1].mxu0  ;;  %v373_v14 = vadd.f32 %v372_v12, %v1829_v9  ;;  %v374_v16 = vpop.f32.mrb[1].mxu1 }
  0xfa   :  { %v304_v15 = vadd.f32 %v303_v13, %v1829_v9  ;;  %v375_v50 = vadd.f32 %v374_v16, %v1829_v9 }
  0xfb   :  { %1131 = vtanh.f32 %v302_v11 }
  0xfc   :  { %1133 = vtanh.f32 %v373_v14 }
  0xfd   :  { %1135 = vtanh.f32 %v304_v15 }
  0xfe   :  { %1137 = vtanh.f32 %v375_v50 }
 0x105   :  { %v1132_v20 = vpop.eup %1131 }
 0x106   :  { %v1134_v21 = vpop.eup %1133 }
 0x107   :  { %v1136_v23 = vpop.eup %1135 }
 0x108   :  { %v1138_v24 = vpop.eup %1137  ;;  %v757_v25 = vcombine.low %v1132_v20, %v1136_v23 }
 0x109   :  { %v758_v26 = vcombine.low %v1134_v21, %v1138_v24 }
 0x10a   :  { %v767_v27 = vrot.slane %v757_v25, %v766_v22 }
 0x10b   :  { %v774_v28 = vrot.slane %v758_v26, %v766_v22 }
 0x10d   :  { %v789_v29 = vcombine.low %v767_v27, %v774_v28 }
 0x10f   :  { %v797_v47 = vrot.slane %v789_v29, %v766_v22 }
 0x118   :  { %v443_v30 = vpop.f32.mrb[2].mxu0  ;;  %v514_v32 = vpop.f32.mrb[2].mxu1 }
 0x119   :  { %v444_v31 = vadd.f32 %v443_v30, %v1829_v9  ;;  %v445_v33 = vpop.f32.mrb[3].mxu0  ;;  %v515_v34 = vadd.f32 %v514_v32, %v1829_v9  ;;  %v516_v36 = vpop.f32.mrb[3].mxu1 }
 0x11a   :  { %v446_v35 = vadd.f32 %v445_v33, %v1829_v9  ;;  %v517_v37 = vadd.f32 %v516_v36, %v1829_v9 }
 0x11b   :  { %1139 = vtanh.f32 %v444_v31 }
 0x11c   :  { %1141 = vtanh.f32 %v515_v34 }
 0x11d   :  { %1143 = vtanh.f32 %v446_v35 }
 0x11e   :  { %1145 = vtanh.f32 %v517_v37 }
 0x125   :  { %v1140_v38 = vpop.eup %1139 }
 0x126   :  { %v1142_v39 = vpop.eup %1141 }
 0x127   :  { %v1144_v40 = vpop.eup %1143 }
 0x128   :  { %v1146_v41 = vpop.eup %1145  ;;  %v759_v42 = vcombine.low %v1140_v38, %v1144_v40 }
 0x129   :  { %v760_v43 = vcombine.low %v1142_v39, %v1146_v41 }
 0x12a   :  { %v781_v44 = vrot.slane %v759_v42, %v766_v22 }
 0x12b   :  { %v788_v45 = vrot.slane %v760_v43, %v766_v22 }
 0x12d   :  { %v790_v46 = vcombine.low %v781_v44, %v788_v45 }
 0x12f   :  { %v804_v48 = vrot.slane %v790_v46, %v766_v22 }
 0x131   :  { %v805_v49 = vcombine.low %v797_v47, %v804_v48 }
 0x133   :  { %847 = vst [vmem:[%s1854_s3] sm:$0xff] %v805_v49 }
 0x138   :  { %v585_v51 = vpop.f32.mrb[4].mxu0  ;;  %v656_v53 = vpop.f32.mrb[4].mxu1 }
 0x139   :  { %v586_v52 = vadd.f32 %v585_v51, %v1829_v9  ;;  %v587_v54 = vpop.f32.mrb[5].mxu0  ;;  %v657_v55 = vadd.f32 %v656_v53, %v1829_v9  ;;  %v658_v57 = vpop.f32.mrb[5].mxu1 }
 0x13a   :  { %v588_v56 = vadd.f32 %v587_v54, %v1829_v9  ;;  %v659_v3 = vadd.f32 %v658_v57, %v1829_v9 }
 0x13b   :  { %1147 = vtanh.f32 %v586_v52 }
 0x13c   :  { %1149 = vtanh.f32 %v657_v55 }
 0x13d   :  { %1151 = vtanh.f32 %v588_v56 }
 0x13e   :  { %1153 = vtanh.f32 %v659_v3 }
 0x145   :  { %v1148_v58 = vpop.eup %1147 }
 0x146   :  { %v1150_v59 = vpop.eup %1149 }
 0x147   :  { %v1152_v60 = vpop.eup %1151 }
 0x148   :  { %v1154_v61 = vpop.eup %1153  ;;  %v806_v62 = vcombine.low %v1148_v58, %v1152_v60 }
 0x149   :  { %v807_v63 = vcombine.low %v1150_v59, %v1154_v61 }
 0x14a   :  { %v814_v0 = vrot.slane %v806_v62, %v766_v22 }
 0x14b   :  { %v821_v1 = vrot.slane %v807_v63, %v766_v22 }
 0x14d   :  { %v829_v2 = vcombine.low %v814_v0, %v821_v1 }
 0x14f   :  { %v836_v11 = vrot.slane %v829_v2, %v766_v22 }
 0x158   :  { %v727_v4 = vpop.f32.mrb[6].mxu0 }
 0x159   :  { %v728_v6 = vadd.f32 %v727_v4, %v1829_v9  ;;  %v908_v7 = vpop.f32.mrb[7].mxu0 }
 0x15b   :  { %1155 = vtanh.f32 %v728_v6 }
 0x165   :  { %v1156_v8 = vpop.eup %1155 }
 0x166   :  { %v828_v10 = vrot.slane %v1156_v8, %v766_v22 }
 0x168   :  { %v843_v12 = vrot.slane %v828_v10, %v766_v22 }
 0x16a   :  { %v844_v13 = vcombine.low %v836_v11, %v843_v12 }
 0x16c   :  { %852 = vst.msk [vmem:[%s1854_s3 + $0x8] sm:$0x1f] %vm850_vm1, %v844_v13 }

</bundles_post_ra>
